<compile_context>
chip_gen: v7x
topology: tpu7x:2x2x1
jax: 0.10.0
libtpu: 0.0.40
codegen_flags: <defaults>
</compile_context>

<pallas_src>
import numpy as np
import jax
import jax.numpy as jnp
from jax import lax
from jax.experimental import pallas as pl
from jax.experimental.pallas import tpu as pltpu


# ----------------------------------------------------------------------------
# Filter-bank construction (mirrors CannyFilter.__init__, numpy only).
# ----------------------------------------------------------------------------
def get_gaussian_kernel(k=3, mu=0, sigma=1, normalize=True):
    gaussian_1D = np.linspace(-1, 1, k)
    x, y = np.meshgrid(gaussian_1D, gaussian_1D)
    distance = (x ** 2 + y ** 2) ** 0.5
    gaussian_2D = np.exp(-(distance - mu) ** 2 / (2 * sigma ** 2))
    gaussian_2D = gaussian_2D / (2 * np.pi * sigma ** 2)
    if normalize:
        gaussian_2D = gaussian_2D / np.sum(gaussian_2D)
    return gaussian_2D


def get_sobel_kernel(k=3):
    rng = np.linspace(-(k // 2), k // 2, k)
    x, y = np.meshgrid(rng, rng)
    num = x
    den = x ** 2 + y ** 2
    den[:, k // 2] = 1
    return num / den


# The normalized 3x3 Gaussian (mu=0, sigma=1) is exactly separable:
#   G2 == outer(g1, g1),  g1 = exp(-x^2/2) / sum(exp(-x^2/2)),  x in {-1, 0, 1}
_G1 = np.exp(-np.linspace(-1.0, 1.0, 3) ** 2 / 2.0)
_G1 = (_G1 / _G1.sum()).astype(np.float32)
assert np.allclose(np.outer(_G1, _G1), get_gaussian_kernel(), atol=1e-7)

_SX = get_sobel_kernel().astype(np.float32)   # [[-.5,0,.5],[-1,0,1],[-.5,0,.5]]
_SOB_CORNER = float(_SX[0, 2])                # 0.5
_SOB_EDGE = float(_SX[1, 2])                  # 1.0

# Directional "thin" kernels: +1 at the center, -1 at the neighbour rotated by
# i*45 deg counter-clockwise from east (analytic result of the torchvision
# rotate + |w|==1 mask construction in get_thin_kernels()).
# TODO(synk): hard-coded offsets to avoid a torchvision dependency.
_DIR_OFFSETS = ((0, 1), (-1, 1), (-1, 0), (-1, -1),
                (0, -1), (1, -1), (1, 0), (1, 1))
_NEIGH = ((-1, -1), (-1, 0), (-1, 1), (0, -1),
          (0, 1), (1, -1), (1, 0), (1, 1))


def _atan(z):
    # Mosaic has no native atan; odd-polynomial approx (|err| <= ~1e-5 rad) with
    # reflection for |z| > 1.  Handles +/-inf (gy/gx with gx == 0) and NaN.
    # NOTE: the 1/az stays an exact divide (not pl.reciprocal(approx=True))
    # because the result feeds a round-to-45deg bucket and an approx reciprocal
    # raises the chance of flipping a bucket right at a boundary.
    az = jnp.abs(z)
    inv = az > 1.0
    t = jnp.where(inv, 1.0 / az, az)
    t2 = t * t
    p = t * (0.9998660 + t2 * (-0.3302995 + t2 * (0.1801410 +
             t2 * (-0.0851330 + t2 * 0.0208351))))
    r = jnp.where(inv, np.float32(np.pi / 2) - p, p)
    return jnp.where(z < 0.0, -r, r)


# ----------------------------------------------------------------------------
# Pallas kernel (one batch element per grid step).
# ----------------------------------------------------------------------------
def _make_canny_kernel(C, H, W):
    inv_c = np.float32(1.0 / C)
    ga = float(_G1[0])      # gaussian separable 1-D outer tap
    gb = float(_G1[1])      # gaussian separable 1-D center tap
    sc = _SOB_CORNER
    se = _SOB_EDGE

    def kernel(thr_ref, img_ref, blur_ref, gx_ref, gy_ref, mag_ref, ori_ref,
               thin_ref):
        # ---- boundary validity masks, built ONCE and reused everywhere -------
        ri = lax.broadcasted_iota(jnp.int32, (H, W), 0)
        ci = lax.broadcasted_iota(jnp.int32, (H, W), 1)
        row_ok = {-1: ri >= 1, 1: ri <= H - 2}
        col_ok = {-1: ci >= 1, 1: ci <= W - 2}
        masks = {}
        for dy in (-1, 0, 1):
            for dx in (-1, 0, 1):
                if dy == 0 and dx == 0:
                    continue
                if dy == 0:
                    masks[(dy, dx)] = col_ok[dx]
                elif dx == 0:
                    masks[(dy, dx)] = row_ok[dy]
                else:
                    masks[(dy, dx)] = row_ok[dy] & col_ok[dx]

        def shift(x, dy, dx):
            # y[i, j] = x[i + dy, j + dx]; zero outside the image (zero padding).
            if dy == 0 and dx == 0:
                return x
            y = x
            if dy != 0:
                y = pltpu.roll(y, shift=(-dy) % H, axis=0)
            if dx != 0:
                y = pltpu.roll(y, shift=(-dx) % W, axis=1)
            return jnp.where(masks[(dy, dx)], y, 0.0)

        # ---- per-channel separable Gaussian blur + channel sum ----------------
        # conv2d(G2, pad=1) == 1-D [ga,gb,ga] row pass then column pass (exact).
        bsum = None
        for c in range(C):
            xc = img_ref[0, c, :, :]
            t = gb * xc + ga * (shift(xc, 0, -1) + shift(xc, 0, 1))
            bc = gb * t + ga * (shift(t, -1, 0) + shift(t, 1, 0))
            blur_ref[0, c, :, :] = bc
            bsum = bc if bsum is None else bsum + bc

        # ---- Sobel on the channel-summed blur (conv linear => sum-then-conv),
        #      sharing one set of shifted neighbours between gx and gy ---------
        nb = {off: shift(bsum, *off) for off in _NEIGH}
        gx = (sc * (nb[(-1, 1)] + nb[(1, 1)] - nb[(-1, -1)] - nb[(1, -1)])
              + se * (nb[(0, 1)] - nb[(0, -1)])) * inv_c
        gy = (sc * (nb[(1, -1)] + nb[(1, 1)] - nb[(-1, -1)] - nb[(-1, 1)])
              + se * (nb[(1, 0)] - nb[(-1, 0)])) * inv_c
        gx_ref[0, 0, :, :] = gx
        gy_ref[0, 0, :, :] = gy

        # ---- gradient magnitude / orientation ---------------------------------
        mag = jnp.sqrt(gx * gx + gy * gy)
        mag_ref[0, 0, :, :] = mag

        # grad_orientation = round((atan(gy/gx)*(360/pi) + 180) / 45) * 45
        #                  = round(atan(gy/gx)*(8/pi) + 4) * 45
        at = _atan(gy / gx)                 # NaN when gx == gy == 0 (as torch)
        rv = jnp.round(at * np.float32(8.0 / np.pi) + 4.0)   # in [0, 8] or NaN
        ori_ref[0, 0, :, :] = rv * 45.0

        # integer NMS bucket: (ori/45) % 8; NaN -> sentinel that never matches
        idx_f = jnp.where(rv >= 8.0, rv - 8.0, rv)
        idx = jnp.where(jnp.isnan(idx_f), 127.0, idx_f).astype(jnp.int32)

        # ---- fused non-maximum suppression ------------------------------------
        # each directional kernel is "+1 center, -1 neighbour" => mag - shift(mag)
        thin = mag
        for pos_i in range(4):
            d_pos = mag - shift(mag, *_DIR_OFFSETS[pos_i])
            d_neg = mag - shift(mag, *_DIR_OFFSETS[pos_i + 4])
            is_max = jnp.minimum(d_pos, d_neg) > 0.0
            is_oriented = (idx == pos_i) | (idx == pos_i + 4)
            to_remove = jnp.logical_and(jnp.logical_not(is_max), is_oriented)
            thin = jnp.where(to_remove, 0.0, thin)

        # ---- per-image normalization + threshold -------------------------------
        # (thin / max(thin)) > thr  ==  thin > thr * max(thin)   (max >= 0; also
        # avoids a full-plane divide and the all-NaN plane when max == 0).
        mx = jnp.max(thin)
        thin_ref[0, 0, :, :] = (thin > thr_ref[0] * mx).astype(jnp.int32)

    return kernel


# ----------------------------------------------------------------------------
# Wrapper (glue).
# ----------------------------------------------------------------------------
def canny_filter(img, threshold):
    B, C, H, W = img.shape
    img = img.astype(jnp.float32)
    thr = jnp.asarray([threshold], dtype=jnp.float32)

    out_shape = (
        jax.ShapeDtypeStruct((B, C, H, W), jnp.float32),  # blurred
        jax.ShapeDtypeStruct((B, 1, H, W), jnp.float32),  # grad_x
        jax.ShapeDtypeStruct((B, 1, H, W), jnp.float32),  # grad_y
        jax.ShapeDtypeStruct((B, 1, H, W), jnp.float32),  # grad_magnitude
        jax.ShapeDtypeStruct((B, 1, H, W), jnp.float32),  # grad_orientation
        jax.ShapeDtypeStruct((B, 1, H, W), jnp.int32),    # thin_edges (bool as i32)
    )
    plane = lambda b: (b, 0, 0, 0)

    # TODO(synk): for large images, add an H-tiling grid axis with a 1-row halo
    # and set vmem_limit_bytes from pltpu.get_tpu_info() (v7x VMEM is 64 MiB);
    # for W << 128, pack images/channels along the lane axis wrapper-side for
    # lane-dense loads/stores.  Neither is needed at these small test shapes.
    outs = pl.pallas_call(
        _make_canny_kernel(C, H, W),
        out_shape=out_shape,
        grid=(B,),
        in_specs=[
            pl.BlockSpec(memory_space=pltpu.MemorySpace.SMEM),  # threshold scalar
            pl.BlockSpec((1, C, H, W), plane),                  # img
        ],
        out_specs=(
            pl.BlockSpec((1, C, H, W), plane),
            pl.BlockSpec((1, 1, H, W), plane),
            pl.BlockSpec((1, 1, H, W), plane),
            pl.BlockSpec((1, 1, H, W), plane),
            pl.BlockSpec((1, 1, H, W), plane),
            pl.BlockSpec((1, 1, H, W), plane),
        ),
        compiler_params=pltpu.CompilerParams(dimension_semantics=("parallel",)),
    )(thr, img)

    blurred, gx, gy, mag, ori, thin_i32 = outs
    return blurred, gx, gy, mag, ori, thin_i32.astype(jnp.bool_)


if __name__ == "__main__":
    key = jax.random.PRNGKey(0)
    img = jax.random.uniform(key, (2, 4, 16, 16), dtype=jnp.float32)
    threshold = 0.2

    outs = canny_filter(img, threshold)
    for o in outs:
        jax.block_until_ready(o)

    blurred, gx, gy, mag, ori, thin = outs
    assert blurred.shape == (2, 4, 16, 16) and blurred.dtype == jnp.float32
    assert gx.shape == gy.shape == mag.shape == ori.shape == (2, 1, 16, 16)
    assert thin.shape == (2, 1, 16, 16) and thin.dtype == jnp.bool_
    print("KERNEL_OK")
</pallas_src>

<mosaic_0001>
module attributes {stable_mosaic.version = 11 : i64} {
  func.func @kernel(%arg0: i32, %arg1: memref<1xf32, #tpu.memory_space<smem>>, %arg2: memref<1x4x16x16xf32, #tpu.memory_space<vmem>>, %arg3: memref<1x4x16x16xf32, #tpu.memory_space<vmem>>, %arg4: memref<1x1x16x16xf32, #tpu.memory_space<vmem>>, %arg5: memref<1x1x16x16xf32, #tpu.memory_space<vmem>>, %arg6: memref<1x1x16x16xf32, #tpu.memory_space<vmem>>, %arg7: memref<1x1x16x16xf32, #tpu.memory_space<vmem>>, %arg8: memref<1x1x16x16xi32, #tpu.memory_space<vmem>>) attributes {dimension_semantics = [#tpu.dimension_semantics<parallel>], iteration_bounds = array<i64: 2>, scalar_prefetch = 0 : i64, scratch_operands = 0 : i64, tpu.core_type = #tpu.core_type<tc>, window_params = [{transform_indices = @transform_0, window_bounds = array<i64: 1>}, {transform_indices = @transform_1, window_bounds = array<i64: 1, 4, 16, 16>}, {transform_indices = @transform_2, window_bounds = array<i64: 1, 4, 16, 16>}, {transform_indices = @transform_3, window_bounds = array<i64: 1, 1, 16, 16>}, {transform_indices = @transform_4, window_bounds = array<i64: 1, 1, 16, 16>}, {transform_indices = @transform_5, window_bounds = array<i64: 1, 1, 16, 16>}, {transform_indices = @transform_6, window_bounds = array<i64: 1, 1, 16, 16>}, {transform_indices = @transform_7, window_bounds = array<i64: 1, 1, 16, 16>}]} {
    %0 = tpu.iota {dimensions = array<i32: 0>} : vector<16x16xi32>
    %1 = tpu.iota {dimensions = array<i32: 1>} : vector<16x16xi32>
    %c1_i32 = arith.constant 1 : i32
    %2 = vector.broadcast %c1_i32 : i32 to vector<16x16xi32>
    %3 = arith.cmpi sge, %0, %2 : vector<16x16xi32>
    %c14_i32 = arith.constant 14 : i32
    %4 = vector.broadcast %c14_i32 : i32 to vector<16x16xi32>
    %5 = arith.cmpi sle, %0, %4 : vector<16x16xi32>
    %c1_i32_0 = arith.constant 1 : i32
    %6 = vector.broadcast %c1_i32_0 : i32 to vector<16x16xi32>
    %7 = arith.cmpi sge, %1, %6 : vector<16x16xi32>
    %c14_i32_1 = arith.constant 14 : i32
    %8 = vector.broadcast %c14_i32_1 : i32 to vector<16x16xi32>
    %9 = arith.cmpi sle, %1, %8 : vector<16x16xi32>
    %10 = arith.andi %3, %7 : vector<16x16xi1>
    %11 = arith.andi %3, %9 : vector<16x16xi1>
    %12 = arith.andi %5, %7 : vector<16x16xi1>
    %13 = arith.andi %5, %9 : vector<16x16xi1>
    %c0 = arith.constant 0 : index
    %c0_2 = arith.constant 0 : index
    %c0_3 = arith.constant 0 : index
    %c0_4 = arith.constant 0 : index
    %14 = vector.load %arg2[%c0, %c0_2, %c0_3, %c0_4] : memref<1x4x16x16xf32, #tpu.memory_space<vmem>>, vector<1x1x16x16xf32>
    %15 = vector.shape_cast %14 : vector<1x1x16x16xf32> to vector<16x16xf32>
    %cst = arith.constant 0.451862752 : f32
    %16 = vector.broadcast %cst : f32 to vector<16x16xf32>
    %17 = arith.mulf %16, %15 : vector<16x16xf32>
    %c1_i32_5 = arith.constant 1 : i32
    %18 = tpu.dynamic_rotate %15 by %c1_i32_5 dim 1 : vector<16x16xf32>, i32 -> vector<16x16xf32>
    %cst_6 = arith.constant 0.000000e+00 : f32
    %19 = vector.broadcast %cst_6 : f32 to vector<16x16xf32>
    %20 = arith.select %7, %18, %19 : vector<16x16xi1>, vector<16x16xf32>
    %c15_i32 = arith.constant 15 : i32
    %21 = tpu.dynamic_rotate %15 by %c15_i32 dim 1 : vector<16x16xf32>, i32 -> vector<16x16xf32>
    %cst_7 = arith.constant 0.000000e+00 : f32
    %22 = vector.broadcast %cst_7 : f32 to vector<16x16xf32>
    %23 = arith.select %9, %21, %22 : vector<16x16xi1>, vector<16x16xf32>
    %24 = arith.addf %20, %23 : vector<16x16xf32>
    %cst_8 = arith.constant 0.274068624 : f32
    %25 = vector.broadcast %cst_8 : f32 to vector<16x16xf32>
    %26 = arith.mulf %25, %24 : vector<16x16xf32>
    %27 = arith.addf %17, %26 : vector<16x16xf32>
    %cst_9 = arith.constant 0.451862752 : f32
    %28 = vector.broadcast %cst_9 : f32 to vector<16x16xf32>
    %29 = arith.mulf %28, %27 : vector<16x16xf32>
    %c1_i32_10 = arith.constant 1 : i32
    %30 = tpu.dynamic_rotate %27 by %c1_i32_10 dim 0 : vector<16x16xf32>, i32 -> vector<16x16xf32>
    %cst_11 = arith.constant 0.000000e+00 : f32
    %31 = vector.broadcast %cst_11 : f32 to vector<16x16xf32>
    %32 = arith.select %3, %30, %31 : vector<16x16xi1>, vector<16x16xf32>
    %c15_i32_12 = arith.constant 15 : i32
    %33 = tpu.dynamic_rotate %27 by %c15_i32_12 dim 0 : vector<16x16xf32>, i32 -> vector<16x16xf32>
    %cst_13 = arith.constant 0.000000e+00 : f32
    %34 = vector.broadcast %cst_13 : f32 to vector<16x16xf32>
    %35 = arith.select %5, %33, %34 : vector<16x16xi1>, vector<16x16xf32>
    %36 = arith.addf %32, %35 : vector<16x16xf32>
    %cst_14 = arith.constant 0.274068624 : f32
    %37 = vector.broadcast %cst_14 : f32 to vector<16x16xf32>
    %38 = arith.mulf %37, %36 : vector<16x16xf32>
    %39 = arith.addf %29, %38 : vector<16x16xf32>
    %c0_15 = arith.constant 0 : index
    %c0_16 = arith.constant 0 : index
    %c0_17 = arith.constant 0 : index
    %c0_18 = arith.constant 0 : index
    %40 = vector.load %arg3[%c0_15, %c0_16, %c0_17, %c0_18] : memref<1x4x16x16xf32, #tpu.memory_space<vmem>>, vector<1x1x16x16xf32>
    %41 = vector.shape_cast %40 : vector<1x1x16x16xf32> to vector<16x16xf32>
    %42 = vector.shape_cast %39 : vector<16x16xf32> to vector<1x1x16x16xf32>
    tpu.vector_store %arg3[%c0_15, %c0_16, %c0_17, %c0_18], %42 {strides = array<i32>} : memref<1x4x16x16xf32, #tpu.memory_space<vmem>>, vector<1x1x16x16xf32>,
    %c0_19 = arith.constant 0 : index
    %c1 = arith.constant 1 : index
    %c0_20 = arith.constant 0 : index
    %c0_21 = arith.constant 0 : index
    %43 = vector.load %arg2[%c0_19, %c1, %c0_20, %c0_21] : memref<1x4x16x16xf32, #tpu.memory_space<vmem>>, vector<1x1x16x16xf32>
    %44 = vector.shape_cast %43 : vector<1x1x16x16xf32> to vector<16x16xf32>
    %cst_22 = arith.constant 0.451862752 : f32
    %45 = vector.broadcast %cst_22 : f32 to vector<16x16xf32>
    %46 = arith.mulf %45, %44 : vector<16x16xf32>
    %c1_i32_23 = arith.constant 1 : i32
    %47 = tpu.dynamic_rotate %44 by %c1_i32_23 dim 1 : vector<16x16xf32>, i32 -> vector<16x16xf32>
    %cst_24 = arith.constant 0.000000e+00 : f32
    %48 = vector.broadcast %cst_24 : f32 to vector<16x16xf32>
    %49 = arith.select %7, %47, %48 : vector<16x16xi1>, vector<16x16xf32>
    %c15_i32_25 = arith.constant 15 : i32
    %50 = tpu.dynamic_rotate %44 by %c15_i32_25 dim 1 : vector<16x16xf32>, i32 -> vector<16x16xf32>
    %cst_26 = arith.constant 0.000000e+00 : f32
    %51 = vector.broadcast %cst_26 : f32 to vector<16x16xf32>
    %52 = arith.select %9, %50, %51 : vector<16x16xi1>, vector<16x16xf32>
    %53 = arith.addf %49, %52 : vector<16x16xf32>
    %cst_27 = arith.constant 0.274068624 : f32
    %54 = vector.broadcast %cst_27 : f32 to vector<16x16xf32>
    %55 = arith.mulf %54, %53 : vector<16x16xf32>
    %56 = arith.addf %46, %55 : vector<16x16xf32>
    %cst_28 = arith.constant 0.451862752 : f32
    %57 = vector.broadcast %cst_28 : f32 to vector<16x16xf32>
    %58 = arith.mulf %57, %56 : vector<16x16xf32>
    %c1_i32_29 = arith.constant 1 : i32
    %59 = tpu.dynamic_rotate %56 by %c1_i32_29 dim 0 : vector<16x16xf32>, i32 -> vector<16x16xf32>
    %cst_30 = arith.constant 0.000000e+00 : f32
    %60 = vector.broadcast %cst_30 : f32 to vector<16x16xf32>
    %61 = arith.select %3, %59, %60 : vector<16x16xi1>, vector<16x16xf32>
    %c15_i32_31 = arith.constant 15 : i32
    %62 = tpu.dynamic_rotate %56 by %c15_i32_31 dim 0 : vector<16x16xf32>, i32 -> vector<16x16xf32>
    %cst_32 = arith.constant 0.000000e+00 : f32
    %63 = vector.broadcast %cst_32 : f32 to vector<16x16xf32>
    %64 = arith.select %5, %62, %63 : vector<16x16xi1>, vector<16x16xf32>
    %65 = arith.addf %61, %64 : vector<16x16xf32>
    %cst_33 = arith.constant 0.274068624 : f32
    %66 = vector.broadcast %cst_33 : f32 to vector<16x16xf32>
    %67 = arith.mulf %66, %65 : vector<16x16xf32>
    %68 = arith.addf %58, %67 : vector<16x16xf32>
    %c0_34 = arith.constant 0 : index
    %c1_35 = arith.constant 1 : index
    %c0_36 = arith.constant 0 : index
    %c0_37 = arith.constant 0 : index
    %69 = vector.load %arg3[%c0_34, %c1_35, %c0_36, %c0_37] : memref<1x4x16x16xf32, #tpu.memory_space<vmem>>, vector<1x1x16x16xf32>
    %70 = vector.shape_cast %69 : vector<1x1x16x16xf32> to vector<16x16xf32>
    %71 = vector.shape_cast %68 : vector<16x16xf32> to vector<1x1x16x16xf32>
    tpu.vector_store %arg3[%c0_34, %c1_35, %c0_36, %c0_37], %71 {strides = array<i32>} : memref<1x4x16x16xf32, #tpu.memory_space<vmem>>, vector<1x1x16x16xf32>,
    %72 = arith.addf %39, %68 : vector<16x16xf32>
    %c0_38 = arith.constant 0 : index
    %c2 = arith.constant 2 : index
    %c0_39 = arith.constant 0 : index
    %c0_40 = arith.constant 0 : index
    %73 = vector.load %arg2[%c0_38, %c2, %c0_39, %c0_40] : memref<1x4x16x16xf32, #tpu.memory_space<vmem>>, vector<1x1x16x16xf32>
    %74 = vector.shape_cast %73 : vector<1x1x16x16xf32> to vector<16x16xf32>
    %cst_41 = arith.constant 0.451862752 : f32
    %75 = vector.broadcast %cst_41 : f32 to vector<16x16xf32>
    %76 = arith.mulf %75, %74 : vector<16x16xf32>
    %c1_i32_42 = arith.constant 1 : i32
    %77 = tpu.dynamic_rotate %74 by %c1_i32_42 dim 1 : vector<16x16xf32>, i32 -> vector<16x16xf32>
    %cst_43 = arith.constant 0.000000e+00 : f32
    %78 = vector.broadcast %cst_43 : f32 to vector<16x16xf32>
    %79 = arith.select %7, %77, %78 : vector<16x16xi1>, vector<16x16xf32>
    %c15_i32_44 = arith.constant 15 : i32
    %80 = tpu.dynamic_rotate %74 by %c15_i32_44 dim 1 : vector<16x16xf32>, i32 -> vector<16x16xf32>
    %cst_45 = arith.constant 0.000000e+00 : f32
    %81 = vector.broadcast %cst_45 : f32 to vector<16x16xf32>
    %82 = arith.select %9, %80, %81 : vector<16x16xi1>, vector<16x16xf32>
    %83 = arith.addf %79, %82 : vector<16x16xf32>
    %cst_46 = arith.constant 0.274068624 : f32
    %84 = vector.broadcast %cst_46 : f32 to vector<16x16xf32>
    %85 = arith.mulf %84, %83 : vector<16x16xf32>
    %86 = arith.addf %76, %85 : vector<16x16xf32>
    %cst_47 = arith.constant 0.451862752 : f32
    %87 = vector.broadcast %cst_47 : f32 to vector<16x16xf32>
    %88 = arith.mulf %87, %86 : vector<16x16xf32>
    %c1_i32_48 = arith.constant 1 : i32
    %89 = tpu.dynamic_rotate %86 by %c1_i32_48 dim 0 : vector<16x16xf32>, i32 -> vector<16x16xf32>
    %cst_49 = arith.constant 0.000000e+00 : f32
    %90 = vector.broadcast %cst_49 : f32 to vector<16x16xf32>
    %91 = arith.select %3, %89, %90 : vector<16x16xi1>, vector<16x16xf32>
    %c15_i32_50 = arith.constant 15 : i32
    %92 = tpu.dynamic_rotate %86 by %c15_i32_50 dim 0 : vector<16x16xf32>, i32 -> vector<16x16xf32>
    %cst_51 = arith.constant 0.000000e+00 : f32
    %93 = vector.broadcast %cst_51 : f32 to vector<16x16xf32>
    %94 = arith.select %5, %92, %93 : vector<16x16xi1>, vector<16x16xf32>
    %95 = arith.addf %91, %94 : vector<16x16xf32>
    %cst_52 = arith.constant 0.274068624 : f32
    %96 = vector.broadcast %cst_52 : f32 to vector<16x16xf32>
    %97 = arith.mulf %96, %95 : vector<16x16xf32>
    %98 = arith.addf %88, %97 : vector<16x16xf32>
    %c0_53 = arith.constant 0 : index
    %c2_54 = arith.constant 2 : index
    %c0_55 = arith.constant 0 : index
    %c0_56 = arith.constant 0 : index
    %99 = vector.load %arg3[%c0_53, %c2_54, %c0_55, %c0_56] : memref<1x4x16x16xf32, #tpu.memory_space<vmem>>, vector<1x1x16x16xf32>
    %100 = vector.shape_cast %99 : vector<1x1x16x16xf32> to vector<16x16xf32>
    %101 = vector.shape_cast %98 : vector<16x16xf32> to vector<1x1x16x16xf32>
    tpu.vector_store %arg3[%c0_53, %c2_54, %c0_55, %c0_56], %101 {strides = array<i32>} : memref<1x4x16x16xf32, #tpu.memory_space<vmem>>, vector<1x1x16x16xf32>,
    %102 = arith.addf %72, %98 : vector<16x16xf32>
    %c0_57 = arith.constant 0 : index
    %c3 = arith.constant 3 : index
    %c0_58 = arith.constant 0 : index
    %c0_59 = arith.constant 0 : index
    %103 = vector.load %arg2[%c0_57, %c3, %c0_58, %c0_59] : memref<1x4x16x16xf32, #tpu.memory_space<vmem>>, vector<1x1x16x16xf32>
    %104 = vector.shape_cast %103 : vector<1x1x16x16xf32> to vector<16x16xf32>
    %cst_60 = arith.constant 0.451862752 : f32
    %105 = vector.broadcast %cst_60 : f32 to vector<16x16xf32>
    %106 = arith.mulf %105, %104 : vector<16x16xf32>
    %c1_i32_61 = arith.constant 1 : i32
    %107 = tpu.dynamic_rotate %104 by %c1_i32_61 dim 1 : vector<16x16xf32>, i32 -> vector<16x16xf32>
    %cst_62 = arith.constant 0.000000e+00 : f32
    %108 = vector.broadcast %cst_62 : f32 to vector<16x16xf32>
    %109 = arith.select %7, %107, %108 : vector<16x16xi1>, vector<16x16xf32>
    %c15_i32_63 = arith.constant 15 : i32
    %110 = tpu.dynamic_rotate %104 by %c15_i32_63 dim 1 : vector<16x16xf32>, i32 -> vector<16x16xf32>
    %cst_64 = arith.constant 0.000000e+00 : f32
    %111 = vector.broadcast %cst_64 : f32 to vector<16x16xf32>
    %112 = arith.select %9, %110, %111 : vector<16x16xi1>, vector<16x16xf32>
    %113 = arith.addf %109, %112 : vector<16x16xf32>
    %cst_65 = arith.constant 0.274068624 : f32
    %114 = vector.broadcast %cst_65 : f32 to vector<16x16xf32>
    %115 = arith.mulf %114, %113 : vector<16x16xf32>
    %116 = arith.addf %106, %115 : vector<16x16xf32>
    %cst_66 = arith.constant 0.451862752 : f32
    %117 = vector.broadcast %cst_66 : f32 to vector<16x16xf32>
    %118 = arith.mulf %117, %116 : vector<16x16xf32>
    %c1_i32_67 = arith.constant 1 : i32
    %119 = tpu.dynamic_rotate %116 by %c1_i32_67 dim 0 : vector<16x16xf32>, i32 -> vector<16x16xf32>
    %cst_68 = arith.constant 0.000000e+00 : f32
    %120 = vector.broadcast %cst_68 : f32 to vector<16x16xf32>
    %121 = arith.select %3, %119, %120 : vector<16x16xi1>, vector<16x16xf32>
    %c15_i32_69 = arith.constant 15 : i32
    %122 = tpu.dynamic_rotate %116 by %c15_i32_69 dim 0 : vector<16x16xf32>, i32 -> vector<16x16xf32>
    %cst_70 = arith.constant 0.000000e+00 : f32
    %123 = vector.broadcast %cst_70 : f32 to vector<16x16xf32>
    %124 = arith.select %5, %122, %123 : vector<16x16xi1>, vector<16x16xf32>
    %125 = arith.addf %121, %124 : vector<16x16xf32>
    %cst_71 = arith.constant 0.274068624 : f32
    %126 = vector.broadcast %cst_71 : f32 to vector<16x16xf32>
    %127 = arith.mulf %126, %125 : vector<16x16xf32>
    %128 = arith.addf %118, %127 : vector<16x16xf32>
    %c0_72 = arith.constant 0 : index
    %c3_73 = arith.constant 3 : index
    %c0_74 = arith.constant 0 : index
    %c0_75 = arith.constant 0 : index
    %129 = vector.load %arg3[%c0_72, %c3_73, %c0_74, %c0_75] : memref<1x4x16x16xf32, #tpu.memory_space<vmem>>, vector<1x1x16x16xf32>
    %130 = vector.shape_cast %129 : vector<1x1x16x16xf32> to vector<16x16xf32>
    %131 = vector.shape_cast %128 : vector<16x16xf32> to vector<1x1x16x16xf32>
    tpu.vector_store %arg3[%c0_72, %c3_73, %c0_74, %c0_75], %131 {strides = array<i32>} : memref<1x4x16x16xf32, #tpu.memory_space<vmem>>, vector<1x1x16x16xf32>,
    %132 = arith.addf %102, %128 : vector<16x16xf32>
    %c1_i32_76 = arith.constant 1 : i32
    %133 = tpu.dynamic_rotate %132 by %c1_i32_76 dim 0 : vector<16x16xf32>, i32 -> vector<16x16xf32>
    %c1_i32_77 = arith.constant 1 : i32
    %134 = tpu.dynamic_rotate %133 by %c1_i32_77 dim 1 : vector<16x16xf32>, i32 -> vector<16x16xf32>
    %cst_78 = arith.constant 0.000000e+00 : f32
    %135 = vector.broadcast %cst_78 : f32 to vector<16x16xf32>
    %136 = arith.select %10, %134, %135 : vector<16x16xi1>, vector<16x16xf32>
    %c1_i32_79 = arith.constant 1 : i32
    %137 = tpu.dynamic_rotate %132 by %c1_i32_79 dim 0 : vector<16x16xf32>, i32 -> vector<16x16xf32>
    %cst_80 = arith.constant 0.000000e+00 : f32
    %138 = vector.broadcast %cst_80 : f32 to vector<16x16xf32>
    %139 = arith.select %3, %137, %138 : vector<16x16xi1>, vector<16x16xf32>
    %c1_i32_81 = arith.constant 1 : i32
    %140 = tpu.dynamic_rotate %132 by %c1_i32_81 dim 0 : vector<16x16xf32>, i32 -> vector<16x16xf32>
    %c15_i32_82 = arith.constant 15 : i32
    %141 = tpu.dynamic_rotate %140 by %c15_i32_82 dim 1 : vector<16x16xf32>, i32 -> vector<16x16xf32>
    %cst_83 = arith.constant 0.000000e+00 : f32
    %142 = vector.broadcast %cst_83 : f32 to vector<16x16xf32>
    %143 = arith.select %11, %141, %142 : vector<16x16xi1>, vector<16x16xf32>
    %c1_i32_84 = arith.constant 1 : i32
    %144 = tpu.dynamic_rotate %132 by %c1_i32_84 dim 1 : vector<16x16xf32>, i32 -> vector<16x16xf32>
    %cst_85 = arith.constant 0.000000e+00 : f32
    %145 = vector.broadcast %cst_85 : f32 to vector<16x16xf32>
    %146 = arith.select %7, %144, %145 : vector<16x16xi1>, vector<16x16xf32>
    %c15_i32_86 = arith.constant 15 : i32
    %147 = tpu.dynamic_rotate %132 by %c15_i32_86 dim 1 : vector<16x16xf32>, i32 -> vector<16x16xf32>
    %cst_87 = arith.constant 0.000000e+00 : f32
    %148 = vector.broadcast %cst_87 : f32 to vector<16x16xf32>
    %149 = arith.select %9, %147, %148 : vector<16x16xi1>, vector<16x16xf32>
    %c15_i32_88 = arith.constant 15 : i32
    %150 = tpu.dynamic_rotate %132 by %c15_i32_88 dim 0 : vector<16x16xf32>, i32 -> vector<16x16xf32>
    %c1_i32_89 = arith.constant 1 : i32
    %151 = tpu.dynamic_rotate %150 by %c1_i32_89 dim 1 : vector<16x16xf32>, i32 -> vector<16x16xf32>
    %cst_90 = arith.constant 0.000000e+00 : f32
    %152 = vector.broadcast %cst_90 : f32 to vector<16x16xf32>
    %153 = arith.select %12, %151, %152 : vector<16x16xi1>, vector<16x16xf32>
    %c15_i32_91 = arith.constant 15 : i32
    %154 = tpu.dynamic_rotate %132 by %c15_i32_91 dim 0 : vector<16x16xf32>, i32 -> vector<16x16xf32>
    %cst_92 = arith.constant 0.000000e+00 : f32
    %155 = vector.broadcast %cst_92 : f32 to vector<16x16xf32>
    %156 = arith.select %5, %154, %155 : vector<16x16xi1>, vector<16x16xf32>
    %c15_i32_93 = arith.constant 15 : i32
    %157 = tpu.dynamic_rotate %132 by %c15_i32_93 dim 0 : vector<16x16xf32>, i32 -> vector<16x16xf32>
    %c15_i32_94 = arith.constant 15 : i32
    %158 = tpu.dynamic_rotate %157 by %c15_i32_94 dim 1 : vector<16x16xf32>, i32 -> vector<16x16xf32>
    %cst_95 = arith.constant 0.000000e+00 : f32
    %159 = vector.broadcast %cst_95 : f32 to vector<16x16xf32>
    %160 = arith.select %13, %158, %159 : vector<16x16xi1>, vector<16x16xf32>
    %161 = arith.addf %143, %160 : vector<16x16xf32>
    %162 = arith.subf %161, %136 : vector<16x16xf32>
    %163 = arith.subf %162, %153 : vector<16x16xf32>
    %cst_96 = arith.constant 5.000000e-01 : f32
    %164 = vector.broadcast %cst_96 : f32 to vector<16x16xf32>
    %165 = arith.mulf %164, %163 : vector<16x16xf32>
    %166 = arith.subf %149, %146 : vector<16x16xf32>
    %cst_97 = arith.constant 1.000000e+00 : f32
    %167 = vector.broadcast %cst_97 : f32 to vector<16x16xf32>
    %168 = arith.mulf %167, %166 : vector<16x16xf32>
    %169 = arith.addf %165, %168 : vector<16x16xf32>
    %cst_98 = arith.constant 2.500000e-01 : f32
    %170 = vector.broadcast %cst_98 : f32 to vector<16x16xf32>
    %171 = arith.mulf %169, %170 : vector<16x16xf32>
    %172 = arith.addf %153, %160 : vector<16x16xf32>
    %173 = arith.subf %172, %136 : vector<16x16xf32>
    %174 = arith.subf %173, %143 : vector<16x16xf32>
    %cst_99 = arith.constant 5.000000e-01 : f32
    %175 = vector.broadcast %cst_99 : f32 to vector<16x16xf32>
    %176 = arith.mulf %175, %174 : vector<16x16xf32>
    %177 = arith.subf %156, %139 : vector<16x16xf32>
    %cst_100 = arith.constant 1.000000e+00 : f32
    %178 = vector.broadcast %cst_100 : f32 to vector<16x16xf32>
    %179 = arith.mulf %178, %177 : vector<16x16xf32>
    %180 = arith.addf %176, %179 : vector<16x16xf32>
    %cst_101 = arith.constant 2.500000e-01 : f32
    %181 = vector.broadcast %cst_101 : f32 to vector<16x16xf32>
    %182 = arith.mulf %180, %181 : vector<16x16xf32>
    %c0_102 = arith.constant 0 : index
    %c0_103 = arith.constant 0 : index
    %c0_104 = arith.constant 0 : index
    %c0_105 = arith.constant 0 : index
    %183 = vector.load %arg4[%c0_102, %c0_103, %c0_104, %c0_105] : memref<1x1x16x16xf32, #tpu.memory_space<vmem>>, vector<1x1x16x16xf32>
    %184 = vector.shape_cast %183 : vector<1x1x16x16xf32> to vector<16x16xf32>
    %185 = vector.shape_cast %171 : vector<16x16xf32> to vector<1x1x16x16xf32>
    tpu.vector_store %arg4[%c0_102, %c0_103, %c0_104, %c0_105], %185 {strides = array<i32>} : memref<1x1x16x16xf32, #tpu.memory_space<vmem>>, vector<1x1x16x16xf32>,
    %c0_106 = arith.constant 0 : index
    %c0_107 = arith.constant 0 : index
    %c0_108 = arith.constant 0 : index
    %c0_109 = arith.constant 0 : index
    %186 = vector.load %arg5[%c0_106, %c0_107, %c0_108, %c0_109] : memref<1x1x16x16xf32, #tpu.memory_space<vmem>>, vector<1x1x16x16xf32>
    %187 = vector.shape_cast %186 : vector<1x1x16x16xf32> to vector<16x16xf32>
    %188 = vector.shape_cast %182 : vector<16x16xf32> to vector<1x1x16x16xf32>
    tpu.vector_store %arg5[%c0_106, %c0_107, %c0_108, %c0_109], %188 {strides = array<i32>} : memref<1x1x16x16xf32, #tpu.memory_space<vmem>>, vector<1x1x16x16xf32>,
    %189 = arith.mulf %171, %171 : vector<16x16xf32>
    %190 = arith.mulf %182, %182 : vector<16x16xf32>
    %191 = arith.addf %189, %190 : vector<16x16xf32>
    %192 = math.sqrt %191 : vector<16x16xf32>
    %c0_110 = arith.constant 0 : index
    %c0_111 = arith.constant 0 : index
    %c0_112 = arith.constant 0 : index
    %c0_113 = arith.constant 0 : index
    %193 = vector.load %arg6[%c0_110, %c0_111, %c0_112, %c0_113] : memref<1x1x16x16xf32, #tpu.memory_space<vmem>>, vector<1x1x16x16xf32>
    %194 = vector.shape_cast %193 : vector<1x1x16x16xf32> to vector<16x16xf32>
    %195 = vector.shape_cast %192 : vector<16x16xf32> to vector<1x1x16x16xf32>
    tpu.vector_store %arg6[%c0_110, %c0_111, %c0_112, %c0_113], %195 {strides = array<i32>} : memref<1x1x16x16xf32, #tpu.memory_space<vmem>>, vector<1x1x16x16xf32>,
    %196 = arith.divf %182, %171 : vector<16x16xf32>
    %197 = math.absf %196 : vector<16x16xf32>
    %cst_114 = arith.constant 1.000000e+00 : f32
    %198 = vector.broadcast %cst_114 : f32 to vector<16x16xf32>
    %199 = arith.cmpf ogt, %197, %198 : vector<16x16xf32>
    %cst_115 = arith.constant 1.000000e+00 : f32
    %200 = vector.broadcast %cst_115 : f32 to vector<16x16xf32>
    %201 = arith.divf %200, %197 : vector<16x16xf32>
    %202 = arith.select %199, %201, %197 : vector<16x16xi1>, vector<16x16xf32>
    %203 = arith.mulf %202, %202 : vector<16x16xf32>
    %cst_116 = arith.constant 2.083510e-02 : f32
    %204 = vector.broadcast %cst_116 : f32 to vector<16x16xf32>
    %205 = arith.mulf %203, %204 : vector<16x16xf32>
    %cst_117 = arith.constant -8.513300e-02 : f32
    %206 = vector.broadcast %cst_117 : f32 to vector<16x16xf32>
    %207 = arith.addf %206, %205 : vector<16x16xf32>
    %208 = arith.mulf %203, %207 : vector<16x16xf32>
    %cst_118 = arith.constant 1.801410e-01 : f32
    %209 = vector.broadcast %cst_118 : f32 to vector<16x16xf32>
    %210 = arith.addf %209, %208 : vector<16x16xf32>
    %211 = arith.mulf %203, %210 : vector<16x16xf32>
    %cst_119 = arith.constant -0.330299497 : f32
    %212 = vector.broadcast %cst_119 : f32 to vector<16x16xf32>
    %213 = arith.addf %212, %211 : vector<16x16xf32>
    %214 = arith.mulf %203, %213 : vector<16x16xf32>
    %cst_120 = arith.constant 9.998660e-01 : f32
    %215 = vector.broadcast %cst_120 : f32 to vector<16x16xf32>
    %216 = arith.addf %215, %214 : vector<16x16xf32>
    %217 = arith.mulf %202, %216 : vector<16x16xf32>
    %cst_121 = arith.constant 1.57079637 : f32
    %218 = vector.broadcast %cst_121 : f32 to vector<16x16xf32>
    %219 = arith.subf %218, %217 : vector<16x16xf32>
    %220 = arith.select %199, %219, %217 : vector<16x16xi1>, vector<16x16xf32>
    %cst_122 = arith.constant 0.000000e+00 : f32
    %221 = vector.broadcast %cst_122 : f32 to vector<16x16xf32>
    %222 = arith.cmpf olt, %196, %221 : vector<16x16xf32>
    %cst_123 = arith.constant 0.000000e+00 : f32
    %223 = vector.broadcast %cst_123 : f32 to vector<16x16xf32>
    %224 = arith.subf %223, %220 : vector<16x16xf32>
    %225 = arith.select %222, %224, %220 : vector<16x16xi1>, vector<16x16xf32>
    %cst_124 = arith.constant 2.54647899 : f32
    %226 = vector.broadcast %cst_124 : f32 to vector<16x16xf32>
    %227 = arith.mulf %225, %226 : vector<16x16xf32>
    %cst_125 = arith.constant 4.000000e+00 : f32
    %228 = vector.broadcast %cst_125 : f32 to vector<16x16xf32>
    %229 = arith.addf %227, %228 : vector<16x16xf32>
    %230 = math.roundeven %229 : vector<16x16xf32>
    %cst_126 = arith.constant 4.500000e+01 : f32
    %231 = vector.broadcast %cst_126 : f32 to vector<16x16xf32>
    %232 = arith.mulf %230, %231 : vector<16x16xf32>
    %c0_127 = arith.constant 0 : index
    %c0_128 = arith.constant 0 : index
    %c0_129 = arith.constant 0 : index
    %c0_130 = arith.constant 0 : index
    %233 = vector.load %arg7[%c0_127, %c0_128, %c0_129, %c0_130] : memref<1x1x16x16xf32, #tpu.memory_space<vmem>>, vector<1x1x16x16xf32>
    %234 = vector.shape_cast %233 : vector<1x1x16x16xf32> to vector<16x16xf32>
    %235 = vector.shape_cast %232 : vector<16x16xf32> to vector<1x1x16x16xf32>
    tpu.vector_store %arg7[%c0_127, %c0_128, %c0_129, %c0_130], %235 {strides = array<i32>} : memref<1x1x16x16xf32, #tpu.memory_space<vmem>>, vector<1x1x16x16xf32>,
    %cst_131 = arith.constant 8.000000e+00 : f32
    %236 = vector.broadcast %cst_131 : f32 to vector<16x16xf32>
    %237 = arith.cmpf oge, %230, %236 : vector<16x16xf32>
    %cst_132 = arith.constant 8.000000e+00 : f32
    %238 = vector.broadcast %cst_132 : f32 to vector<16x16xf32>
    %239 = arith.subf %230, %238 : vector<16x16xf32>
    %240 = arith.select %237, %239, %230 : vector<16x16xi1>, vector<16x16xf32>
    %241 = arith.cmpf one, %240, %240 : vector<16x16xf32>
    %cst_133 = arith.constant 1.270000e+02 : f32
    %242 = vector.broadcast %cst_133 : f32 to vector<16x16xf32>
    %243 = arith.select %241, %242, %240 : vector<16x16xi1>, vector<16x16xf32>
    %244 = arith.fptosi %243 : vector<16x16xf32> to vector<16x16xi32>
    %c15_i32_134 = arith.constant 15 : i32
    %245 = tpu.dynamic_rotate %192 by %c15_i32_134 dim 1 : vector<16x16xf32>, i32 -> vector<16x16xf32>
    %cst_135 = arith.constant 0.000000e+00 : f32
    %246 = vector.broadcast %cst_135 : f32 to vector<16x16xf32>
    %247 = arith.select %9, %245, %246 : vector<16x16xi1>, vector<16x16xf32>
    %248 = arith.subf %192, %247 : vector<16x16xf32>
    %c1_i32_136 = arith.constant 1 : i32
    %249 = tpu.dynamic_rotate %192 by %c1_i32_136 dim 1 : vector<16x16xf32>, i32 -> vector<16x16xf32>
    %cst_137 = arith.constant 0.000000e+00 : f32
    %250 = vector.broadcast %cst_137 : f32 to vector<16x16xf32>
    %251 = arith.select %7, %249, %250 : vector<16x16xi1>, vector<16x16xf32>
    %252 = arith.subf %192, %251 : vector<16x16xf32>
    %253 = arith.minimumf %248, %252 : vector<16x16xf32>
    %cst_138 = arith.constant 0.000000e+00 : f32
    %254 = vector.broadcast %cst_138 : f32 to vector<16x16xf32>
    %255 = arith.cmpf ogt, %253, %254 : vector<16x16xf32>
    %c0_i32 = arith.constant 0 : i32
    %256 = vector.broadcast %c0_i32 : i32 to vector<16x16xi32>
    %257 = arith.cmpi eq, %244, %256 : vector<16x16xi32>
    %c4_i32 = arith.constant 4 : i32
    %258 = vector.broadcast %c4_i32 : i32 to vector<16x16xi32>
    %259 = arith.cmpi eq, %244, %258 : vector<16x16xi32>
    %260 = arith.ori %257, %259 : vector<16x16xi1>
    %cst_139 = arith.constant dense<true> : vector<16x16xi1>
    %261 = arith.xori %255, %cst_139 : vector<16x16xi1>
    %262 = arith.andi %261, %260 : vector<16x16xi1>
    %cst_140 = arith.constant 0.000000e+00 : f32
    %263 = vector.broadcast %cst_140 : f32 to vector<16x16xf32>
    %264 = arith.select %262, %263, %192 : vector<16x16xi1>, vector<16x16xf32>
    %c1_i32_141 = arith.constant 1 : i32
    %265 = tpu.dynamic_rotate %192 by %c1_i32_141 dim 0 : vector<16x16xf32>, i32 -> vector<16x16xf32>
    %c15_i32_142 = arith.constant 15 : i32
    %266 = tpu.dynamic_rotate %265 by %c15_i32_142 dim 1 : vector<16x16xf32>, i32 -> vector<16x16xf32>
    %cst_143 = arith.constant 0.000000e+00 : f32
    %267 = vector.broadcast %cst_143 : f32 to vector<16x16xf32>
    %268 = arith.select %11, %266, %267 : vector<16x16xi1>, vector<16x16xf32>
    %269 = arith.subf %192, %268 : vector<16x16xf32>
    %c15_i32_144 = arith.constant 15 : i32
    %270 = tpu.dynamic_rotate %192 by %c15_i32_144 dim 0 : vector<16x16xf32>, i32 -> vector<16x16xf32>
    %c1_i32_145 = arith.constant 1 : i32
    %271 = tpu.dynamic_rotate %270 by %c1_i32_145 dim 1 : vector<16x16xf32>, i32 -> vector<16x16xf32>
    %cst_146 = arith.constant 0.000000e+00 : f32
    %272 = vector.broadcast %cst_146 : f32 to vector<16x16xf32>
    %273 = arith.select %12, %271, %272 : vector<16x16xi1>, vector<16x16xf32>
    %274 = arith.subf %192, %273 : vector<16x16xf32>
    %275 = arith.minimumf %269, %274 : vector<16x16xf32>
    %cst_147 = arith.constant 0.000000e+00 : f32
    %276 = vector.broadcast %cst_147 : f32 to vector<16x16xf32>
    %277 = arith.cmpf ogt, %275, %276 : vector<16x16xf32>
    %c1_i32_148 = arith.constant 1 : i32
    %278 = vector.broadcast %c1_i32_148 : i32 to vector<16x16xi32>
    %279 = arith.cmpi eq, %244, %278 : vector<16x16xi32>
    %c5_i32 = arith.constant 5 : i32
    %280 = vector.broadcast %c5_i32 : i32 to vector<16x16xi32>
    %281 = arith.cmpi eq, %244, %280 : vector<16x16xi32>
    %282 = arith.ori %279, %281 : vector<16x16xi1>
    %cst_149 = arith.constant dense<true> : vector<16x16xi1>
    %283 = arith.xori %277, %cst_149 : vector<16x16xi1>
    %284 = arith.andi %283, %282 : vector<16x16xi1>
    %cst_150 = arith.constant 0.000000e+00 : f32
    %285 = vector.broadcast %cst_150 : f32 to vector<16x16xf32>
    %286 = arith.select %284, %285, %264 : vector<16x16xi1>, vector<16x16xf32>
    %c1_i32_151 = arith.constant 1 : i32
    %287 = tpu.dynamic_rotate %192 by %c1_i32_151 dim 0 : vector<16x16xf32>, i32 -> vector<16x16xf32>
    %cst_152 = arith.constant 0.000000e+00 : f32
    %288 = vector.broadcast %cst_152 : f32 to vector<16x16xf32>
    %289 = arith.select %3, %287, %288 : vector<16x16xi1>, vector<16x16xf32>
    %290 = arith.subf %192, %289 : vector<16x16xf32>
    %c15_i32_153 = arith.constant 15 : i32
    %291 = tpu.dynamic_rotate %192 by %c15_i32_153 dim 0 : vector<16x16xf32>, i32 -> vector<16x16xf32>
    %cst_154 = arith.constant 0.000000e+00 : f32
    %292 = vector.broadcast %cst_154 : f32 to vector<16x16xf32>
    %293 = arith.select %5, %291, %292 : vector<16x16xi1>, vector<16x16xf32>
    %294 = arith.subf %192, %293 : vector<16x16xf32>
    %295 = arith.minimumf %290, %294 : vector<16x16xf32>
    %cst_155 = arith.constant 0.000000e+00 : f32
    %296 = vector.broadcast %cst_155 : f32 to vector<16x16xf32>
    %297 = arith.cmpf ogt, %295, %296 : vector<16x16xf32>
    %c2_i32 = arith.constant 2 : i32
    %298 = vector.broadcast %c2_i32 : i32 to vector<16x16xi32>
    %299 = arith.cmpi eq, %244, %298 : vector<16x16xi32>
    %c6_i32 = arith.constant 6 : i32
    %300 = vector.broadcast %c6_i32 : i32 to vector<16x16xi32>
    %301 = arith.cmpi eq, %244, %300 : vector<16x16xi32>
    %302 = arith.ori %299, %301 : vector<16x16xi1>
    %cst_156 = arith.constant dense<true> : vector<16x16xi1>
    %303 = arith.xori %297, %cst_156 : vector<16x16xi1>
    %304 = arith.andi %303, %302 : vector<16x16xi1>
    %cst_157 = arith.constant 0.000000e+00 : f32
    %305 = vector.broadcast %cst_157 : f32 to vector<16x16xf32>
    %306 = arith.select %304, %305, %286 : vector<16x16xi1>, vector<16x16xf32>
    %c1_i32_158 = arith.constant 1 : i32
    %307 = tpu.dynamic_rotate %192 by %c1_i32_158 dim 0 : vector<16x16xf32>, i32 -> vector<16x16xf32>
    %c1_i32_159 = arith.constant 1 : i32
    %308 = tpu.dynamic_rotate %307 by %c1_i32_159 dim 1 : vector<16x16xf32>, i32 -> vector<16x16xf32>
    %cst_160 = arith.constant 0.000000e+00 : f32
    %309 = vector.broadcast %cst_160 : f32 to vector<16x16xf32>
    %310 = arith.select %10, %308, %309 : vector<16x16xi1>, vector<16x16xf32>
    %311 = arith.subf %192, %310 : vector<16x16xf32>
    %c15_i32_161 = arith.constant 15 : i32
    %312 = tpu.dynamic_rotate %192 by %c15_i32_161 dim 0 : vector<16x16xf32>, i32 -> vector<16x16xf32>
    %c15_i32_162 = arith.constant 15 : i32
    %313 = tpu.dynamic_rotate %312 by %c15_i32_162 dim 1 : vector<16x16xf32>, i32 -> vector<16x16xf32>
    %cst_163 = arith.constant 0.000000e+00 : f32
    %314 = vector.broadcast %cst_163 : f32 to vector<16x16xf32>
    %315 = arith.select %13, %313, %314 : vector<16x16xi1>, vector<16x16xf32>
    %316 = arith.subf %192, %315 : vector<16x16xf32>
    %317 = arith.minimumf %311, %316 : vector<16x16xf32>
    %cst_164 = arith.constant 0.000000e+00 : f32
    %318 = vector.broadcast %cst_164 : f32 to vector<16x16xf32>
    %319 = arith.cmpf ogt, %317, %318 : vector<16x16xf32>
    %c3_i32 = arith.constant 3 : i32
    %320 = vector.broadcast %c3_i32 : i32 to vector<16x16xi32>
    %321 = arith.cmpi eq, %244, %320 : vector<16x16xi32>
    %c7_i32 = arith.constant 7 : i32
    %322 = vector.broadcast %c7_i32 : i32 to vector<16x16xi32>
    %323 = arith.cmpi eq, %244, %322 : vector<16x16xi32>
    %324 = arith.ori %321, %323 : vector<16x16xi1>
    %cst_165 = arith.constant dense<true> : vector<16x16xi1>
    %325 = arith.xori %319, %cst_165 : vector<16x16xi1>
    %326 = arith.andi %325, %324 : vector<16x16xi1>
    %cst_166 = arith.constant 0.000000e+00 : f32
    %327 = vector.broadcast %cst_166 : f32 to vector<16x16xf32>
    %328 = arith.select %326, %327, %306 : vector<16x16xi1>, vector<16x16xf32>
    %329 = vector.shape_cast %328 : vector<16x16xf32> to vector<1x16x16xf32>
    %cst_167 = arith.constant dense<0xFF800000> : vector<1xf32>
    %330 = vector.multi_reduction <maximumf>, %329, %cst_167 [1, 2] : vector<1x16x16xf32> to vector<1xf32>
    %331 = vector.shape_cast %330 : vector<1xf32> to vector<1x1x1xf32>
    %332 = vector.extract %331[0, 0, 0] : f32 from vector<1x1x1xf32>
    %c0_168 = arith.constant 0 : index
    %333 = memref.load %arg1[%c0_168] : memref<1xf32, #tpu.memory_space<smem>>
    %334 = arith.mulf %333, %332 : f32
    %335 = vector.broadcast %334 : f32 to vector<16x16xf32>
    %336 = arith.cmpf ogt, %328, %335 : vector<16x16xf32>
    %337 = arith.extui %336 : vector<16x16xi1> to vector<16x16xi32>
    %c0_169 = arith.constant 0 : index
    %c0_170 = arith.constant 0 : index
    %c0_171 = arith.constant 0 : index
    %c0_172 = arith.constant 0 : index
    %338 = vector.load %arg8[%c0_169, %c0_170, %c0_171, %c0_172] : memref<1x1x16x16xi32, #tpu.memory_space<vmem>>, vector<1x1x16x16xi32>
    %339 = vector.shape_cast %338 : vector<1x1x16x16xi32> to vector<16x16xi32>
    %340 = vector.shape_cast %337 : vector<16x16xi32> to vector<1x1x16x16xi32>
    tpu.vector_store %arg8[%c0_169, %c0_170, %c0_171, %c0_172], %340 {strides = array<i32>} : memref<1x1x16x16xi32, #tpu.memory_space<vmem>>, vector<1x1x16x16xi32>,
    return
  }
  func.func @transform_0(%arg0: i32) -> i32 {
    %c0_i32 = arith.constant 0 : i32
    %c0_i32_0 = arith.constant 0 : i32
    return %c0_i32 : i32
  }
  func.func @transform_1(%arg0: i32) -> (i32, i32, i32, i32) {
    %c0_i32 = arith.constant 0 : i32
    %c0_i32_0 = arith.constant 0 : i32
    %c0_i32_1 = arith.constant 0 : i32
    %c0_i32_2 = arith.constant 0 : i32
    return %arg0, %c0_i32, %c0_i32_0, %c0_i32_1 : i32, i32, i32, i32
  }
  func.func @transform_2(%arg0: i32) -> (i32, i32, i32, i32) {
    %c0_i32 = arith.constant 0 : i32
    %c0_i32_0 = arith.constant 0 : i32
    %c0_i32_1 = arith.constant 0 : i32
    %c0_i32_2 = arith.constant 0 : i32
    return %arg0, %c0_i32, %c0_i32_0, %c0_i32_1 : i32, i32, i32, i32
  }
  func.func @transform_3(%arg0: i32) -> (i32, i32, i32, i32) {
    %c0_i32 = arith.constant 0 : i32
    %c0_i32_0 = arith.constant 0 : i32
    %c0_i32_1 = arith.constant 0 : i32
    %c0_i32_2 = arith.constant 0 : i32
    return %arg0, %c0_i32, %c0_i32_0, %c0_i32_1 : i32, i32, i32, i32
  }
  func.func @transform_4(%arg0: i32) -> (i32, i32, i32, i32) {
    %c0_i32 = arith.constant 0 : i32
    %c0_i32_0 = arith.constant 0 : i32
    %c0_i32_1 = arith.constant 0 : i32
    %c0_i32_2 = arith.constant 0 : i32
    return %arg0, %c0_i32, %c0_i32_0, %c0_i32_1 : i32, i32, i32, i32
  }
  func.func @transform_5(%arg0: i32) -> (i32, i32, i32, i32) {
    %c0_i32 = arith.constant 0 : i32
    %c0_i32_0 = arith.constant 0 : i32
    %c0_i32_1 = arith.constant 0 : i32
    %c0_i32_2 = arith.constant 0 : i32
    return %arg0, %c0_i32, %c0_i32_0, %c0_i32_1 : i32, i32, i32, i32
  }
  func.func @transform_6(%arg0: i32) -> (i32, i32, i32, i32) {
    %c0_i32 = arith.constant 0 : i32
    %c0_i32_0 = arith.constant 0 : i32
    %c0_i32_1 = arith.constant 0 : i32
    %c0_i32_2 = arith.constant 0 : i32
    return %arg0, %c0_i32, %c0_i32_0, %c0_i32_1 : i32, i32, i32, i32
  }
  func.func @transform_7(%arg0: i32) -> (i32, i32, i32, i32) {
    %c0_i32 = arith.constant 0 : i32
    %c0_i32_0 = arith.constant 0 : i32
    %c0_i32_1 = arith.constant 0 : i32
    %c0_i32_2 = arith.constant 0 : i32
    return %arg0, %c0_i32, %c0_i32_0, %c0_i32_1 : i32, i32, i32, i32
  }
}

</mosaic_0001>

<bundles_post_ra>
// kernel: tpu_custom_call.1
= control target key start
LH: loop header
LB: loop body
LE: loop exit
PB: predicated region body
PF: predicated region fallthrough
CT: control target
= control target key end

     0   :  { %s2897_s0 = inlined_call_operand.<no memory space> [shape: f32[1], index: 0, kind: input, shape index: {}]   ;;  %s2898_s1 = inlined_call_operand.hbm [shape: f32[2,4,16,16], index: 1, kind: input, shape index: {}]   ;;  %s2899_s2 = inlined_call_operand.hbm [shape: f32[2,4,16,16], index: 2, kind: output, shape index: {0}]   ;;  %s2900_s3 = inlined_call_operand.hbm [shape: f32[2,1,16,16], index: 3, kind: output, shape index: {1}]   ;;  %s2901_s4 = inlined_call_operand.hbm [shape: f32[2,1,16,16], index: 4, kind: output, shape index: {2}]   ;;  %s2902_s5 = inlined_call_operand.hbm [shape: f32[2,1,16,16], index: 5, kind: output, shape index: {3}]   ;;  %s2903_s6 = inlined_call_operand.hbm [shape: f32[2,1,16,16], index: 6, kind: output, shape index: {4}]   ;;  %s2904_s7 = inlined_call_operand.hbm [shape: s32[2,1,16,16], index: 7, kind: output, shape index: {5}]  }
   0x1   :  { %2924 = sst [smem:[#allocation24_spill]] %s2898_s1 }
   0x2   :  { %2925 = sst [smem:[#allocation25_spill]] %s2900_s3 }
   0x3   :  { %2926 = sst [smem:[#allocation26_spill]] %s2902_s5 }
   0x4   :  { %13 = sst [smem:[#allocation2]] %s2897_s0 }
   0x5   :  { %14 = vsyncpa [#allocation4], 0 }
   0x6   :  { %16 = vsyncpa [#allocation4 + $0x1], 0 }
   0x7   :  { %17 = vsyncpa [#allocation5], 0 }
   0x8   :  { %19 = vsyncpa [#allocation5 + $0x1], 0 }
   0x9   :  { %20 = vsyncpa [#allocation8], 0 }
   0xa   :  { %22 = vsyncpa [#allocation8 + $0x1], 0 }
   0xb   :  { %23 = vsyncpa [#allocation11], 0 }
   0xc   :  { %25 = vsyncpa [#allocation11 + $0x1], 0 }
   0xd   :  { %26 = vsyncpa [#allocation14], 0 }
   0xe   :  { %28 = vsyncpa [#allocation14 + $0x1], 0  ;;  %s1861_s26 = smov 0   ;;  %s1863_s27 = smov 0  }
   0xf   :  { %s1865_s28 = smov 0   ;;  %s1867_s29 = smov 0  }
  0x10 LB: > { %2927 = sst [smem:[#allocation20_spill]] %s1792_s27  ;;  %s1882_s0 = sadd.s32 4294967295, %s1800_s29   ;;  %s1800_s29 = sphi %s1867_s29, %s3007_s29   ;;  %s1796_s28 = sphi %s1865_s28, %s3010_s28   ;;  %s1792_s27 = sphi %s1863_s27, %s3009_s27   ;;  %s1788_s26 = sphi %s1861_s26, %s3008_s26  }
  0x11   : > { %2928 = sst [smem:[#allocation21_spill]] %s1796_s28  ;;  %s2918_s30 = sadd.s32 4294967294, %s1800_s29  }
  0x12   : > { %s1886_s8 = sadd.s32 1, %s1800_s29   ;;  %s62_s9 = sadd.s32 1, %s1796_s28 }
  0x13   : > { %2929 = sst [smem:[#allocation22_spill]] %s1886_s8  ;;  %s59_s10 = ssub.s32 %s1800_s29, %s1886_s8 }
  0x14   : > { %p69_p0 = scmp.ne.s32.totalorder %s1796_s28, %s1792_s27  ;;  %p60_p1 = scmp.eq.s32.totalorder %s59_s10, 0 }
  0x15   : > { %p70_p2 = scmp.eq.s32.totalorder %s1800_s29, 0  ;;  %p75_p3 = scmp.ne.s32.totalorder %s1792_s27, %s1788_s26 }
  0x16   : > { %p76_p4 = scmp.eq.s32.totalorder %s1882_s0, 0  ;;  %p99_p7 = scmp.eq.s32.totalorder %s1882_s0, 1 }
  0x17   : > { %s1898_s11 = scalar_select %p60_p1, %s1796_s28, %s62_s9  }
  0x18   : > { %p1900_p5 = por %p70_p2, %p69_p0  ;;  %p1904_p6 = por %p76_p4, %p75_p3 }
  0x19   : > { %2930 = sst [smem:[#allocation23_spill]] %s1898_s11  ;;  %p105_p8 = scmp.eq.s32.totalorder %s2918_s30, 1 }
  0x1a   : > { %p1497_p10 = scmp.lt.s32.totalorder %s1800_s29, 2  ;;  %p1913_p11 = por %p99_p7, %p69_p0 }
  0x1b   : > { %p1917_p12 = por %p105_p8, %p75_p3  ;;  %s258_s16 = sand.u32 1, %s1796_s28  }
  0x1c   : > { %s2933_s14 = scalar_select %p1913_p11, 1, 0 }
  0x1d   : > { %s2934_s15 = scalar_select %p1917_p12, 1, 0 }
  0x1e   : > { %s1445_s17 = sshll.u32 %s1800_s29, 10  ;;  %s1400_s18 = sshll.u32 %s258_s16, 6 }
  0x1f   : > { %s2935_s1 = sld [smem:[#allocation24_spill]]  ;;  %s262_s22 = scalar_lea.vmem [#allocation3], %s1400_s18 }
  0x20   : > { %s269_s23 = sshll.u32 %s262_s22, 4  ;;  %p1930_p13 = pnand %p1497_p10, %p1900_p5  ;;  %s1934_s23 = int_to_ptr.vmem [resolvable:$true] %s269_s23 }
  0x21   : > { %s1936_s25 = scalar_lea.sflag [#allocation4], %s258_s16 }
  0x22   : > { %p1554_p1 = pneg %p1930_p13 }
  0x25   : > { %s1926_s21 = scalar_lea.hbm %s2935_s1, %s1445_s17  ;;  %s1557_s17 = scalar_lea.hbm %s2935_s1, 2048 }
  0x26   : > { %s1552_s9 = scalar_lea.hbm %s1926_s21, 1024  ;;  %p1558_p4 = scmp.lt.u32.totalorder %s1926_s21, %s2935_s1 }
  0x27   : > { %p1553_p0 = scmp.ne.s32.totalorder %s1926_s21, %s1552_s9  ;;  %p1559_p5 = scmp.lt.u32.totalorder %s1557_s17, %s1552_s9 }
  0x28   : > { %p1561_p8 = scmp.lt.u32.totalorder %s1552_s9, %s1926_s21 }
  0x29   : > { %p1555_p2 = pnand %p1554_p1, %p1553_p0  ;;  %p1560_p7 = por %p1559_p5, %p1558_p4 }
  0x2b   : > { %p1556_p3 = pneg %p1555_p2  ;;  %p1562_p10 = por %p1561_p8, %p1560_p7 }
  0x2d   : > { %p1563_p9 = pnand %p1562_p10, %p1556_p3 }
  0x2f   : > { %1566 = shalt.err (!%p1563_p9)
}
  0x30   : > { %s1567_s16 = scalar_lea.vmem %s1934_s23, 1024  ;;  %s1802_s20 = smov [#allocation3]  }
  0x31   : > { %p1568_p0 = scmp.ne.s32.totalorder %s1934_s23, %s1567_s16  ;;  %s1572_s22 = sshll.u32 %s1802_s20, 4  ;;  %s1573_s22 = int_to_ptr.vmem [resolvable:$false] %s1572_s22 }
  0x32   : > { %s1574_s10 = scalar_lea.vmem %s1573_s22, 2048  ;;  %p1575_p11 = scmp.lt.s32.totalorder %s1934_s23, %s1573_s22 }
  0x33   : > { %p1570_p2 = pnand %p1568_p0, %p1554_p1  ;;  %p1576_p4 = scmp.lt.s32.totalorder %s1574_s10, %s1567_s16 }
  0x35   : > { %p1571_p12 = pneg %p1570_p2  ;;  %p1577_p5 = por %p1576_p4, %p1575_p11 }
  0x37   : > { %p1578_p7 = pnand %p1577_p5, %p1571_p12 }
  0x39   : > { %1581 = shalt.err (!%p1578_p7)
}
  0x3a   : > { %s1803_s9 = smov 128   ;;  %s1804_s12 = smov 8  }
  0x3b   : > { %1477 = dma.hbm_to_vmem [thread:$0]  (!%p1930_p13), %s1926_s21, 1024, %s1934_s23, %s1936_s25, %s1803_s9, %s1803_s9, %s1804_s12  }
  0x3c   : > { %p1403_p9 = scmp.ge.s32.totalorder %s1800_s29, 1  ;;  %p277_p1 = scmp.lt.s32.totalorder %s1800_s29, 3 }
  0x3e   : > { %p278_p3 = pnand %p1403_p9, %p277_p1 }
  0x3f   : > { %s1967_s17 = sand.u32 (!%p278_p3), 1, %s1792_s27  }
  0x40   : > { %281 = sbr.rel (%p278_p3) target bundleno = 1483 (0x5cb), region = 28  ;;  %s1404_s18 = sshll.u32 (!%p278_p3), %s1967_s17, 6 }
  0x41   : > { %s284_s19 = scalar_lea.sflag (!%p278_p3), [#allocation4], %s1967_s17  ;;  %s287_s16 = scalar_lea.vmem (!%p278_p3), [#allocation3], %s1404_s18 }
  0x47   : > { %1767 = dma.done.wait (%p1904_p6), %s284_s19, 1024  }
  0x48   : > { %1769 = vsyncadd (%p1904_p6), %s284_s19, 4294966272  ;;  %v1977_v0 = vld [vmem:[%s287_s16] sm:$0xff]  ;;  %v1979_v1 = vld [vmem:[%s287_s16 + $0x10] sm:$0xff]  ;;  %s1805_s21 = smov 16   ;;  %vm366_vm0 = vcmask 1047680   ;;  %s1806_s13 = smov 113   ;;  %v343_v40 = vlaneseq }
  0x49   : > { %367 = vrot.lane.b32.xlu0 %v1977_v0, %s1805_s21  ;;  %433 = vrot.lane.b32.xlu1 %v1979_v1, %s1805_s21  ;;  %v1985_v2 = vld [vmem:[%s287_s16 + $0x8] sm:$0xff]  ;;  %v1987_v3 = vld [vmem:[%s287_s16 + $0x18] sm:$0xff]  ;;  %s1807_s23 = smov 127   ;;  %v364_v48 = vmul.f32 0.45186275, %v1977_v0  ;;  %vm2906_vm7 = vcmask 130048  }
  0x4a   : > { %v1993_v4 = vld [vmem:[%s287_s16 + $0x20] sm:$0xff]  ;;  %v1995_v5 = vld [vmem:[%s287_s16 + $0x28] sm:$0xff]  ;;  %v2001_v6 = vld [vmem:[%s287_s16 + $0x30] sm:$0xff]  ;;  %v2065_v41 = vand.u32 127, %v343_v40  ;;  %v2074_v49 = vshrl.u32 %v343_v40, 7  ;;  %s2121_s24 = scalar_lea.vmem [#allocation6], %s1404_s18 }
  0x4b   : > { %v2003_v7 = vld [vmem:[%s287_s16 + $0x38] sm:$0xff]  ;;  %v365_v55 = vmul.f32 0.45186275, %v1985_v2  ;;  %s2317_s25 = sshll.u32 %s1967_s17, 4  ;;  %s2919_s12 = sand.u32 1, %s1882_s0  }
  0x4c   : > { %vm2907_vm1 = vcmp.ge.s32.totalorder %v2065_v41, 1  ;;  %vm2908_vm2 = vcmp.le.s32.totalorder %v2065_v41, 14  ;;  %v2082_v58 = vadd.s32 8, %v2074_v49  ;;  %vm348_vm3 = vcmp.ge.s32.totalorder %v2074_v49, 1  ;;  %s2320_s20 = scalar_lea.vmem [#allocation9], %s2317_s25  ;;  %s2327_s22 = scalar_lea.vmem [#allocation7], %s2317_s25 }
  0x4d   : > { %370 = vrot.lane.b32.xlu0 %v1985_v2, %s1805_s21  ;;  %436 = vrot.lane.b32.xlu1 %v1987_v3, %s1805_s21  ;;  %vm407_vm4 = vcmp.lt.s32.totalorder %v2074_v49, 1  ;;  %vm414_vm6 = vcmp.lt.s32.totalorder %v2074_v49, 7  ;;  %vm2265_vm9 = vmand %vm348_vm3, %vm2908_vm2  ;;  %s2353_s10 = scalar_lea.vmem [#allocation10], %s2317_s25  ;;  %s2405_s9 = scalar_lea.vmem [#allocation12], %s2317_s25 }
  0x4e   : > { %vm351_vm5 = vcmp.le.s32.totalorder %v2082_v58, 14  ;;  %vm2290_vm11 = vmand %vm348_vm3, %vm2907_vm1  ;;  %s2651_s18 = sshll.u32 %s1882_s0, 8  ;;  %s1106_s19 = sshll.u32 %s2327_s22, 4  ;;  %s2660_s19 = int_to_ptr.vmem [resolvable:$true] %s1106_s19 }
  0x4f   : > { %vm2257_vm8 = vmand %vm351_vm5, %vm2908_vm2  ;;  %s2997_s3 = sld [smem:[#allocation25_spill]]  ;;  %s1582_s30 = scalar_lea.vmem %s2660_s19, 256 }
  0x50   : > { %vm2273_vm10 = vmand %vm351_vm5, %vm2907_vm1  ;;  %p1583_p6 = scmp.ne.s32.totalorder %s2660_s19, %s1582_s30  ;;  %p2998_p11 = scmp.ne.s32.totalorder %s2933_s14, 0 }
  0x51   : > { %499 = vrot.lane.b32.xlu0 %v1993_v4, %s1805_s21  ;;  %502 = vrot.lane.b32.xlu1 %v1995_v5, %s1805_s21  ;;  %s1809_s1 = smov [#allocation7]  }
  0x52   : > { %p1584_p12 = pnand %p1583_p6, %p2998_p11 }
  0x54   : > { %p1585_p13 = pneg %p1584_p12 }
  0x55   : > { %565 = vrot.lane.b32.xlu0 %v2001_v6, %s1805_s21  ;;  %568 = vrot.lane.b32.xlu1 %v2003_v7, %s1805_s21 }
  0xbb   : > { %v368_v8 = vpop.permute.xlu0 %367  ;;  %v434_v9 = vpop.permute.xlu1 %433 }
  0xbc   : > { %v369_v10 = vsel %vm366_vm0, %v368_v8, %v1977_v0  ;;  %v435_v11 = vsel %vm366_vm0, %v434_v9, %v1979_v1  ;;  %v431_v9 = vmul.f32 0.45186275, %v1979_v1 }
  0xbd   : > { %373 = vrot.lane.b32.xlu0 %v369_v10, %s1805_s21 }
  0xbf   : > { %v371_v12 = vpop.permute.xlu0 %370  ;;  %v437_v13 = vpop.permute.xlu1 %436 }
  0xc0   : > { %v372_v14 = vsel %vm366_vm0, %v371_v12, %v1985_v2  ;;  %v438_v15 = vsel %vm366_vm0, %v437_v13, %v1987_v3 }
  0xc1   : > { %375 = vrot.lane.b32.xlu1 %v372_v14, %s1805_s21  ;;  %439 = vrot.lane.b32.xlu0 %v435_v11, %s1805_s21 }
  0xc3   : > { %v500_v16 = vpop.permute.xlu0 %499  ;;  %v503_v17 = vpop.permute.xlu1 %502 }
  0xc4   : > { %v501_v18 = vsel %vm366_vm0, %v500_v16, %v1993_v4  ;;  %v504_v19 = vsel %vm366_vm0, %v503_v17, %v1995_v5 }
  0xc5   : > { %441 = vrot.lane.b32.xlu1 %v438_v15, %s1805_s21  ;;  %505 = vrot.lane.b32.xlu0 %v501_v18, %s1805_s21 }
  0xc7   : > { %v566_v20 = vpop.permute.xlu0 %565  ;;  %v569_v21 = vpop.permute.xlu1 %568 }
  0xc8   : > { %v567_v22 = vsel %vm366_vm0, %v566_v20, %v2001_v6  ;;  %v570_v23 = vsel %vm366_vm0, %v569_v21, %v2003_v7 }
  0xc9   : > { %507 = vrot.lane.b32.xlu1 %v504_v19, %s1805_s21  ;;  %571 = vrot.lane.b32.xlu0 %v567_v22, %s1805_s21 }
  0xcd   : > { %573 = vrot.lane.b32.xlu1 %v570_v23, %s1805_s21  ;;  %v432_v23 = vmul.f32 0.45186275, %v1987_v3 }
 0x12f   : > { %v374_v24 = vpop.permute.xlu0 %373 }
 0x130   : > { %v377_v25 = vsel %vm366_vm0, %v374_v24, %v1977_v0 }
 0x131   : > { %381 = vrot.lane.b32.xlu0 %v377_v25, %s1806_s13 }
 0x133   : > { %v376_v26 = vpop.permute.xlu1 %375  ;;  %v440_v27 = vpop.permute.xlu0 %439 }
 0x134   : > { %v378_v28 = vsel %vm366_vm0, %v376_v26, %v1985_v2  ;;  %v443_v29 = vsel %vm366_vm0, %v440_v27, %v1979_v1 }
 0x135   : > { %383 = vrot.lane.b32.xlu1 %v378_v28, %s1806_s13  ;;  %389 = vrot.lane.b32.xlu0 %v377_v25, %s1807_s23 }
 0x137   : > { %v442_v30 = vpop.permute.xlu1 %441  ;;  %v506_v32 = vpop.permute.xlu0 %505 }
 0x138   : > { %v444_v31 = vsel %vm366_vm0, %v442_v30, %v1987_v3  ;;  %v509_v33 = vsel %vm366_vm0, %v506_v32, %v1993_v4 }
 0x139   : > { %391 = vrot.lane.b32.xlu1 %v378_v28, %s1807_s23  ;;  %447 = vrot.lane.b32.xlu0 %v443_v29, %s1806_s13 }
 0x13b   : > { %v508_v34 = vpop.permute.xlu1 %507  ;;  %v572_v36 = vpop.permute.xlu0 %571 }
 0x13c   : > { %v510_v35 = vsel %vm366_vm0, %v508_v34, %v1995_v5  ;;  %v575_v37 = vsel %vm366_vm0, %v572_v36, %v2001_v6 }
 0x13d   : > { %449 = vrot.lane.b32.xlu1 %v444_v31, %s1806_s13  ;;  %455 = vrot.lane.b32.xlu0 %v443_v29, %s1807_s23 }
 0x13f   : > { %v574_v38 = vpop.permute.xlu1 %573 }
 0x140   : > { %v576_v39 = vsel %vm366_vm0, %v574_v38, %v2003_v7 }
 0x141   : > { %457 = vrot.lane.b32.xlu1 %v444_v31, %s1807_s23  ;;  %513 = vrot.lane.b32.xlu0 %v509_v33, %s1806_s13 }
 0x145   : > { %515 = vrot.lane.b32.xlu1 %v510_v35, %s1806_s13  ;;  %521 = vrot.lane.b32.xlu0 %v509_v33, %s1807_s23 }
 0x149   : > { %523 = vrot.lane.b32.xlu1 %v510_v35, %s1807_s23  ;;  %579 = vrot.lane.b32.xlu0 %v575_v37, %s1806_s13 }
 0x14d   : > { %581 = vrot.lane.b32.xlu1 %v576_v39, %s1806_s13  ;;  %587 = vrot.lane.b32.xlu0 %v575_v37, %s1807_s23 }
 0x151   : > { %589 = vrot.lane.b32.xlu1 %v576_v39, %s1807_s23 }
 0x1a3   : > { %v382_v42 = vpop.permute.xlu0 %381 }
 0x1a4   : > { %v387_v45 = vsel %vm2907_vm1, %v382_v42, 0.0  ;;  %v497_v42 = vmul.f32 0.45186275, %v1993_v4 }
 0x1a7   : > { %v384_v43 = vpop.permute.xlu1 %383  ;;  %v390_v44 = vpop.permute.xlu0 %389 }
 0x1a8   : > { %v395_v46 = vsel %vm2908_vm2, %v390_v44, 0.0  ;;  %v388_v53 = vsel %vm2907_vm1, %v384_v43, 0.0 }
 0x1a9   : > { %v397_v47 = vadd.f32 %v395_v46, %v387_v45 }
 0x1ab   : > { %v399_v50 = vmul.f32 0.27406862, %v397_v47  ;;  %v392_v51 = vpop.permute.xlu1 %391  ;;  %v448_v52 = vpop.permute.xlu0 %447 }
 0x1ac   : > { %v396_v54 = vsel %vm2908_vm2, %v392_v51, 0.0  ;;  %v453_v62 = vsel %vm2907_vm1, %v448_v52, 0.0 }
 0x1ad   : > { %v398_v56 = vadd.f32 %v396_v54, %v388_v53  ;;  %v401_v57 = vadd.f32 %v399_v50, %v364_v48  ;;  %v498_v50 = vmul.f32 0.45186275, %v1995_v5 }
 0x1af   : > { %v400_v59 = vmul.f32 0.27406862, %v398_v56  ;;  %v450_v60 = vpop.permute.xlu1 %449  ;;  %v456_v61 = vpop.permute.xlu0 %455  ;;  %v405_v8 = vrot.slane %v401_v57, 7  ;;  %v412_v10 = vrot.slane %v401_v57, 1  ;;  %v403_v31 = vmul.f32 0.45186275, %v401_v57 }
 0x1b0   : > { %v461_v63 = vsel %vm2908_vm2, %v456_v61, 0.0  ;;  %v454_v16 = vsel %vm2907_vm1, %v450_v60, 0.0 }
 0x1b1   : > { %v402_v0 = vadd.f32 %v400_v59, %v365_v55  ;;  %v463_v2 = vadd.f32 %v461_v63, %v453_v62 }
 0x1b3   : > { %v406_v11 = vrot.slane %v402_v0, 7  ;;  %v413_v12 = vrot.slane %v402_v0, 1  ;;  %v465_v13 = vmul.f32 0.27406862, %v463_v2  ;;  %v458_v14 = vpop.permute.xlu1 %457  ;;  %v514_v15 = vpop.permute.xlu0 %513  ;;  %v404_v32 = vmul.f32 0.45186275, %v402_v0 }
 0x1b4   : > { %v462_v17 = vsel %vm2908_vm2, %v458_v14, 0.0  ;;  %v519_v28 = vsel %vm2907_vm1, %v514_v15, 0.0 }
 0x1b5   : > { %v408_v18 = vsel %vm407_vm4, %v405_v8, %v406_v11  ;;  %v409_v19 = vsel %vm407_vm4, %v406_v11, %v405_v8  ;;  %v415_v1 = vsel %vm414_vm6, %v412_v10, %v413_v12  ;;  %v416_v20 = vsel %vm414_vm6, %v413_v12, %v412_v10 }
 0x1b6   : > { %v410_v21 = vsel %vm348_vm3, %v409_v19, 0.0  ;;  %v418_v22 = vsel %vm351_vm5, %v416_v20, 0.0  ;;  %v464_v24 = vadd.f32 %v462_v17, %v454_v16  ;;  %v467_v27 = vadd.f32 %v465_v13, %v431_v9 }
 0x1b7   : > { %v419_v25 = vadd.f32 %v415_v1, %v410_v21  ;;  %v420_v26 = vadd.f32 %v418_v22, %v408_v18  ;;  %v516_v29 = vpop.permute.xlu1 %515  ;;  %v522_v30 = vpop.permute.xlu0 %521  ;;  %v563_v17 = vmul.f32 0.45186275, %v2001_v6 }
 0x1b8   : > { %v466_v33 = vmul.f32 0.27406862, %v464_v24  ;;  %v527_v36 = vsel %vm2908_vm2, %v522_v30, 0.0  ;;  %v471_v40 = vrot.slane %v467_v27, 7  ;;  %v477_v45 = vrot.slane %v467_v27, 1 }
 0x1b9   : > { %v421_v34 = vmul.f32 0.27406862, %v419_v25  ;;  %v422_v35 = vmul.f32 0.27406862, %v420_v26  ;;  %v529_v37 = vadd.f32 %v527_v36, %v519_v28  ;;  %v520_v4 = vsel %vm2907_vm1, %v516_v29, 0.0 }
 0x1ba   : > { %v468_v3 = vadd.f32 %v466_v33, %v432_v23  ;;  %v469_v8 = vmul.f32 0.45186275, %v467_v27  ;;  %v564_v26 = vmul.f32 0.45186275, %v2003_v7 }
 0x1bb   : > { %v2114_v38 = vadd.f32 %v421_v34, %v403_v31  ;;  %v2116_v39 = vadd.f32 %v422_v35, %v404_v32  ;;  %v524_v43 = vpop.permute.xlu1 %523  ;;  %v580_v44 = vpop.permute.xlu0 %579  ;;  %v531_v48 = vmul.f32 0.27406862, %v529_v37 }
 0x1bc   : > { %v472_v46 = vrot.slane %v468_v3, 7  ;;  %v478_v47 = vrot.slane %v468_v3, 1  ;;  %v528_v51 = vsel %vm2908_vm2, %v524_v43, 0.0  ;;  %v585_v52 = vsel %vm2907_vm1, %v580_v44, 0.0 }
 0x1bd   : > { %426 = vst.msk [vmem:[%s2121_s24] sm:$0xff] %vm2906_vm7, %v2114_v38  ;;  %427 = vst.msk [vmem:[%s2121_s24 + $0x8] sm:$0xff] %vm2906_vm7, %v2116_v39  ;;  %v533_v59 = vadd.f32 %v531_v48, %v497_v42  ;;  %v530_v60 = vadd.f32 %v528_v51, %v520_v4  ;;  %v470_v10 = vmul.f32 0.45186275, %v468_v3 }
 0x1be   : > { %v473_v53 = vsel %vm407_vm4, %v471_v40, %v472_v46  ;;  %v474_v54 = vsel %vm407_vm4, %v472_v46, %v471_v40  ;;  %v479_v55 = vsel %vm414_vm6, %v477_v45, %v478_v47  ;;  %v480_v56 = vsel %vm414_vm6, %v478_v47, %v477_v45 }
 0x1bf   : > { %v475_v5 = vsel %vm348_vm3, %v474_v54, 0.0  ;;  %v482_v57 = vsel %vm351_vm5, %v480_v56, 0.0  ;;  %v582_v61 = vpop.permute.xlu1 %581  ;;  %v588_v62 = vpop.permute.xlu0 %587  ;;  %v532_v9 = vmul.f32 0.27406862, %v530_v60  ;;  %v537_v14 = vrot.slane %v533_v59, 7 }
 0x1c0   : > { %v483_v63 = vadd.f32 %v479_v55, %v475_v5  ;;  %v484_v0 = vadd.f32 %v482_v57, %v473_v53  ;;  %v593_v2 = vsel %vm2908_vm2, %v588_v62, 0.0  ;;  %v586_v16 = vsel %vm2907_vm1, %v582_v61, 0.0 }
 0x1c1   : > { %v595_v13 = vadd.f32 %v593_v2, %v585_v52  ;;  %v534_v15 = vadd.f32 %v532_v9, %v498_v50  ;;  %v543_v20 = vrot.slane %v533_v59, 1  ;;  %v535_v35 = vmul.f32 0.45186275, %v533_v59 }
 0x1c2   : > { %v485_v11 = vmul.f32 0.27406862, %v483_v63  ;;  %v486_v12 = vmul.f32 0.27406862, %v484_v0 }
 0x1c3   : > { %v590_v18 = vpop.permute.xlu1 %589  ;;  %v538_v22 = vrot.slane %v534_v15, 7  ;;  %v544_v23 = vrot.slane %v534_v15, 1  ;;  %v597_v24 = vmul.f32 0.27406862, %v595_v13  ;;  %v536_v36 = vmul.f32 0.45186275, %v534_v15 }
 0x1c4   : > { %v487_v19 = vadd.f32 %v485_v11, %v469_v8  ;;  %v488_v1 = vadd.f32 %v486_v12, %v470_v10  ;;  %v594_v21 = vsel %vm2908_vm2, %v590_v18, 0.0 }
 0x1c5   : > { %v596_v25 = vadd.f32 %v594_v21, %v586_v16  ;;  %v539_v6 = vsel %vm407_vm4, %v537_v14, %v538_v22  ;;  %v540_v27 = vsel %vm407_vm4, %v538_v22, %v537_v14  ;;  %v545_v28 = vsel %vm414_vm6, %v543_v20, %v544_v23 }
 0x1c6   : > { %1413 = vst.msk [vmem:[%s2121_s24 + $0x10] sm:$0xff] %vm2906_vm7, %v487_v19  ;;  %1414 = vst.msk [vmem:[%s2121_s24 + $0x18] sm:$0xff] %vm2906_vm7, %v488_v1  ;;  %v546_v29 = vsel %vm414_vm6, %v544_v23, %v543_v20  ;;  %v541_v30 = vsel %vm348_vm3, %v540_v27, 0.0  ;;  %v599_v33 = vadd.f32 %v597_v24, %v563_v17  ;;  %v492_v56 = vadd.f32 %v487_v19, %v2114_v38 }
 0x1c7   : > { %v548_v31 = vsel %vm351_vm5, %v546_v29, 0.0  ;;  %v549_v7 = vadd.f32 %v545_v28, %v541_v30  ;;  %v598_v34 = vmul.f32 0.27406862, %v596_v25  ;;  %v493_v59 = vadd.f32 %v488_v1, %v2116_v39 }
 0x1c8   : > { %v550_v32 = vadd.f32 %v548_v31, %v539_v6  ;;  %v603_v44 = vrot.slane %v599_v33, 7  ;;  %v609_v46 = vrot.slane %v599_v33, 1  ;;  %v601_v5 = vmul.f32 0.45186275, %v599_v33 }
 0x1c9   : > { %v551_v3 = vmul.f32 0.27406862, %v549_v7  ;;  %v600_v40 = vadd.f32 %v598_v34, %v564_v26 }
 0x1ca   : > { %v552_v37 = vmul.f32 0.27406862, %v550_v32 }
 0x1cb   : > { %v553_v42 = vadd.f32 %v551_v3, %v535_v35  ;;  %v604_v45 = vrot.slane %v600_v40, 7  ;;  %v610_v47 = vrot.slane %v600_v40, 1  ;;  %v602_v60 = vmul.f32 0.45186275, %v600_v40 }
 0x1cc   : > { %v554_v43 = vadd.f32 %v552_v37, %v536_v36 }
 0x1cd   : > { %1417 = vst.msk [vmem:[%s2121_s24 + $0x20] sm:$0xff] %vm2906_vm7, %v553_v42  ;;  %v605_v48 = vsel %vm407_vm4, %v603_v44, %v604_v45  ;;  %v606_v4 = vsel %vm407_vm4, %v604_v45, %v603_v44  ;;  %v611_v51 = vsel %vm414_vm6, %v609_v46, %v610_v47  ;;  %v612_v52 = vsel %vm414_vm6, %v610_v47, %v609_v46 }
 0x1ce   : > { %1418 = vst.msk [vmem:[%s2121_s24 + $0x28] sm:$0xff] %vm2906_vm7, %v554_v43  ;;  %v607_v50 = vsel %vm348_vm3, %v606_v4, 0.0  ;;  %v614_v53 = vsel %vm351_vm5, %v612_v52, 0.0  ;;  %v558_v62 = vadd.f32 %v553_v42, %v492_v56  ;;  %v559_v0 = vadd.f32 %v554_v43, %v493_v59 }
 0x1cf   : > { %v615_v54 = vadd.f32 %v611_v51, %v607_v50  ;;  %v616_v55 = vadd.f32 %v614_v53, %v605_v48  ;;  %v2937_v45 = vmov 0 }
 0x1d0   : > { %v2938_v45 = vsel %vm2257_vm8, 4294967295, %v2937_v45 }
 0x1d1   : > { %v617_v57 = vmul.f32 0.27406862, %v615_v54  ;;  %v618_v61 = vmul.f32 0.27406862, %v616_v55 }
 0x1d3   : > { %v619_v63 = vadd.f32 %v617_v57, %v601_v5  ;;  %v620_v2 = vadd.f32 %v618_v61, %v602_v60 }
 0x1d5   : > { %1421 = vst.msk [vmem:[%s2121_s24 + $0x30] sm:$0xff] %vm2906_vm7, %v619_v63  ;;  %v624_v8 = vadd.f32 %v619_v63, %v558_v62  ;;  %1422 = vst.msk [vmem:[%s2121_s24 + $0x38] sm:$0xff] %vm2906_vm7, %v620_v2  ;;  %v625_v9 = vadd.f32 %v620_v2, %v559_v0 }
 0x1d7   : > { %v626_v10 = vrot.slane %v624_v8, 7  ;;  %v627_v11 = vrot.slane %v625_v9, 7  ;;  %v692_v12 = vrot.slane %v624_v8, 1  ;;  %v693_v13 = vrot.slane %v625_v9, 1 }
 0x1d9   : > { %v2196_v38 = vsel %vm407_vm4, %v627_v11, %v626_v10  ;;  %v2200_v39 = vsel %vm407_vm4, %v626_v10, %v627_v11  ;;  %v2208_v14 = vsel %vm414_vm6, %v692_v12, %v693_v13  ;;  %v695_v15 = vsel %vm414_vm6, %v693_v13, %v692_v12 }
 0x1da   : > { %630 = vrot.lane.b32.xlu0 %v2196_v38, %s1805_s21  ;;  %633 = vrot.lane.b32.xlu1 %v2200_v39, %s1805_s21  ;;  %v652_v52 = vsel %vm348_vm3, %v2196_v38, 0.0  ;;  %v719_v53 = vsel %vm351_vm5, %v695_v15, 0.0 }
 0x1db   : > { %v750_v12 = vsub.f32 %v2208_v14, %v652_v52  ;;  %v751_v13 = vsub.f32 %v719_v53, %v2200_v39 }
 0x1de   : > { %696 = vrot.lane.b32.xlu0 %v2208_v14, %s1805_s21  ;;  %699 = vrot.lane.b32.xlu1 %v695_v15, %s1805_s21 }
 0x1e2   : > { %662 = vrot.lane.b32.xlu0 %v624_v8, %s1805_s21  ;;  %665 = vrot.lane.b32.xlu1 %v625_v9, %s1805_s21 }
 0x24c   : > { %v631_v16 = vpop.permute.xlu0 %630  ;;  %v634_v17 = vpop.permute.xlu1 %633 }
 0x24d   : > { %v632_v18 = vsel %vm366_vm0, %v631_v16, %v2196_v38  ;;  %v635_v19 = vsel %vm366_vm0, %v634_v17, %v2200_v39 }
 0x24e   : > { %636 = vrot.lane.b32.xlu0 %v632_v18, %s1805_s21  ;;  %638 = vrot.lane.b32.xlu1 %v635_v19, %s1805_s21 }
 0x250   : > { %v697_v1 = vpop.permute.xlu0 %696  ;;  %v700_v20 = vpop.permute.xlu1 %699 }
 0x251   : > { %v698_v21 = vsel %vm366_vm0, %v697_v1, %v2208_v14  ;;  %v701_v22 = vsel %vm366_vm0, %v700_v20, %v695_v15 }
 0x252   : > { %702 = vrot.lane.b32.xlu0 %v698_v21, %s1805_s21  ;;  %704 = vrot.lane.b32.xlu1 %v701_v22, %s1805_s21 }
 0x254   : > { %v663_v23 = vpop.permute.xlu0 %662  ;;  %v666_v24 = vpop.permute.xlu1 %665 }
 0x255   : > { %v664_v25 = vsel %vm366_vm0, %v663_v23, %v624_v8  ;;  %v667_v26 = vsel %vm366_vm0, %v666_v24, %v625_v9 }
 0x256   : > { %668 = vrot.lane.b32.xlu0 %v664_v25, %s1805_s21  ;;  %670 = vrot.lane.b32.xlu1 %v667_v26, %s1805_s21 }
 0x2c0   : > { %v637_v6 = vpop.permute.xlu0 %636  ;;  %v639_v27 = vpop.permute.xlu1 %638 }
 0x2c1   : > { %v640_v33 = vsel %vm366_vm0, %v637_v6, %v2196_v38  ;;  %v641_v34 = vsel %vm366_vm0, %v639_v27, %v2200_v39 }
 0x2c4   : > { %v703_v28 = vpop.permute.xlu0 %702  ;;  %v705_v29 = vpop.permute.xlu1 %704 }
 0x2c5   : > { %v706_v35 = vsel %vm366_vm0, %v703_v28, %v2208_v14  ;;  %v707_v36 = vsel %vm366_vm0, %v705_v29, %v695_v15 }
 0x2c8   : > { %v669_v30 = vpop.permute.xlu0 %668  ;;  %v671_v31 = vpop.permute.xlu1 %670 }
 0x2c9   : > { %v672_v7 = vsel %vm366_vm0, %v669_v30, %v624_v8  ;;  %v673_v32 = vsel %vm366_vm0, %v671_v31, %v625_v9 }
 0x2ca   : > { %676 = vrot.lane.b32.xlu0 %v672_v7, %s1806_s13  ;;  %678 = vrot.lane.b32.xlu1 %v673_v32, %s1806_s13 }
 0x2ce   : > { %654 = vrot.lane.b32.xlu0 %v640_v33, %s1807_s23  ;;  %656 = vrot.lane.b32.xlu1 %v641_v34, %s1807_s23 }
 0x2d2   : > { %710 = vrot.lane.b32.xlu0 %v706_v35, %s1806_s13  ;;  %712 = vrot.lane.b32.xlu1 %v707_v36, %s1806_s13 }
 0x2d6   : > { %720 = vrot.lane.b32.xlu0 %v706_v35, %s1807_s23  ;;  %722 = vrot.lane.b32.xlu1 %v707_v36, %s1807_s23 }
 0x2da   : > { %644 = vrot.lane.b32.xlu0 %v640_v33, %s1806_s13  ;;  %646 = vrot.lane.b32.xlu1 %v641_v34, %s1806_s13 }
 0x2de   : > { %684 = vrot.lane.b32.xlu0 %v672_v7, %s1807_s23  ;;  %686 = vrot.lane.b32.xlu1 %v673_v32, %s1807_s23 }
 0x33c   : > { %v677_v3 = vpop.permute.xlu0 %676  ;;  %v679_v37 = vpop.permute.xlu1 %678 }
 0x33d   : > { %v682_v20 = vsel %vm2907_vm1, %v677_v3, 0.0  ;;  %v683_v21 = vsel %vm2907_vm1, %v679_v37, 0.0 }
 0x340   : > { %v655_v40 = vpop.permute.xlu0 %654  ;;  %v657_v42 = vpop.permute.xlu1 %656 }
 0x341   : > { %v660_v55 = vsel %vm2265_vm9, %v655_v40, 0.0  ;;  %v661_v56 = vsel %vm2908_vm2, %v657_v42, 0.0 }
 0x344   : > { %v711_v43 = vpop.permute.xlu0 %710  ;;  %v713_v44 = vpop.permute.xlu1 %712 }
 0x345   : > { %v716_v5 = vsel %vm2907_vm1, %v711_v43, 0.0  ;;  %v717_v57 = vsel %vm2273_vm10, %v713_v44, 0.0 }
 0x348   : > { %v721_v48 = vpop.permute.xlu0 %720  ;;  %v723_v4 = vpop.permute.xlu1 %722 }
 0x349   : > { %v726_v50 = vsel %vm2908_vm2, %v721_v48, 0.0  ;;  %v727_v51 = vsel %vm2257_vm8, %v723_v4, 0.0 }
 0x34a   : > { %v728_v59 = vadd.f32 %v726_v50, %v660_v55  ;;  %v742_v60 = vadd.f32 %v726_v50, %v716_v5  ;;  %v729_v61 = vadd.f32 %v727_v51, %v661_v56  ;;  %v743_v62 = vadd.f32 %v727_v51, %v717_v57 }
 0x34c   : > { %v645_v63 = vpop.permute.xlu0 %644  ;;  %v647_v0 = vpop.permute.xlu1 %646 }
 0x34d   : > { %v650_v2 = vsel %vm2290_vm11, %v645_v63, 0.0  ;;  %v651_v8 = vsel %vm2907_vm1, %v647_v0, 0.0 }
 0x34e   : > { %v730_v9 = vsub.f32 %v728_v59, %v650_v2  ;;  %v744_v10 = vsub.f32 %v742_v60, %v650_v2  ;;  %v731_v11 = vsub.f32 %v729_v61, %v651_v8  ;;  %v745_v38 = vsub.f32 %v743_v62, %v651_v8 }
 0x350   : > { %v732_v15 = vsub.f32 %v730_v9, %v716_v5  ;;  %v746_v16 = vsub.f32 %v744_v10, %v660_v55  ;;  %v733_v17 = vsub.f32 %v731_v11, %v717_v57  ;;  %v747_v18 = vsub.f32 %v745_v38, %v661_v56  ;;  %v685_v19 = vpop.permute.xlu0 %684  ;;  %v687_v1 = vpop.permute.xlu1 %686 }
 0x351   : > { %v690_v22 = vsel %vm2908_vm2, %v685_v19, 0.0  ;;  %v691_v14 = vsel %vm2908_vm2, %v687_v1, 0.0 }
 0x352   : > { %v734_v39 = vmul.f32 0.5, %v732_v15  ;;  %v748_v23 = vmul.f32 0.5, %v746_v16  ;;  %v735_v24 = vmul.f32 0.5, %v733_v17  ;;  %v749_v25 = vmul.f32 0.5, %v747_v18 }
 0x353   : > { %v736_v26 = vsub.f32 %v690_v22, %v682_v20  ;;  %v737_v6 = vsub.f32 %v691_v14, %v683_v21 }
 0x354   : > { %v752_v27 = vadd.f32 %v750_v12, %v748_v23  ;;  %v753_v28 = vadd.f32 %v751_v13, %v749_v25 }
 0x355   : > { %v738_v29 = vadd.f32 %v736_v26, %v734_v39  ;;  %v739_v30 = vadd.f32 %v737_v6, %v735_v24 }
 0x356   : > { %v754_v31 = vmul.f32 0.25, %v752_v27  ;;  %v755_v7 = vmul.f32 0.25, %v753_v28 }
 0x357   : > { %v740_v32 = vmul.f32 0.25, %v738_v29  ;;  %v741_v33 = vmul.f32 0.25, %v739_v30 }
 0x358   : > { %758 = vst.msk [vmem:[%s2320_s20] sm:$0xff] %vm2906_vm7, %v754_v31  ;;  %v762_v34 = vmul.f32 %v754_v31, %v754_v31  ;;  %759 = vst.msk [vmem:[%s2320_s20 + $0x8] sm:$0xff] %vm2906_vm7, %v755_v7  ;;  %v763_v35 = vmul.f32 %v755_v7, %v755_v7 }
 0x359   : > { %756 = vst.msk [vmem:[%s2327_s22] sm:$0xff] %vm2906_vm7, %v740_v32  ;;  %v760_v36 = vmul.f32 %v740_v32, %v740_v32  ;;  %1540 = vrcp.f32 %v740_v32  ;;  %757 = vst.msk [vmem:[%s2327_s22 + $0x8] sm:$0xff] %vm2906_vm7, %v741_v33  ;;  %v761_v3 = vmul.f32 %v741_v33, %v741_v33  ;;  %s1586_s22 = sshll.u32 %s1809_s1, 4  ;;  %s1587_s22 = int_to_ptr.vmem [resolvable:$false] %s1586_s22 }
 0x35a   : > { %1542 = vrcp.f32 %v741_v33  ;;  %s1588_s11 = scalar_lea.vmem %s1587_s22, 512  ;;  %p1589_p8 = scmp.lt.s32.totalorder %s2660_s19, %s1587_s22 }
 0x35b   : > { %v764_v37 = vadd.f32 %v762_v34, %v760_v36  ;;  %v765_v40 = vadd.f32 %v763_v35, %v761_v3  ;;  %p1590_p10 = scmp.lt.s32.totalorder %s1588_s11, %s1582_s30 }
 0x35d   : > { %1544 = vrsqrt.f32 %v764_v37  ;;  %vm768_vm12 = vcmp.eq.f32.partialorder %v764_v37, inf  ;;  %v771_v55 = vand.u32 2147483648, %v764_v37  ;;  %vm770_vm13 = vcmp.eq.f32.partialorder %v764_v37, 0.0  ;;  %p1591_p0 = por %p1590_p10, %p1589_p8 }
 0x35e   : > { %1546 = vrsqrt.f32 %v765_v40  ;;  %vm775_vm14 = vcmp.eq.f32.partialorder %v765_v40, inf  ;;  %v778_v57 = vand.u32 2147483648, %v765_v40  ;;  %vm777_vm15 = vcmp.eq.f32.partialorder %v765_v40, 0.0 }
 0x35f   : > { %p1592_p2 = pnand %p1591_p0, %p1585_p13 }
 0x363   : > { %v1541_v42 = vpop.eup %1540 }
 0x364   : > { %v1543_v43 = vpop.eup %1542  ;;  %v2333_v44 = vmul.f32 %v1541_v42, %v754_v31 }
 0x365   : > { %v2335_v48 = vmul.f32 %v1543_v43, %v755_v7 }
 0x366   : > { %v2338_v4 = vand.u32 2147483647, %v2333_v44 }
 0x367   : > { %v1545_v50 = vpop.eup %1544  ;;  %v2341_v51 = vand.u32 2147483647, %v2335_v48 }
 0x368   : > { %v1547_v52 = vpop.eup %1546  ;;  %v767_v53 = vmul.f32 %v1545_v50, %v764_v37  ;;  %1548 = vrcp.f32 %v2338_v4 }
 0x369   : > { %v774_v56 = vmul.f32 %v1547_v52, %v765_v40  ;;  %1550 = vrcp.f32 %v2341_v51 }
 0x36a   : > { %v769_v5 = vsel %vm768_vm12, %v764_v37, %v767_v53  ;;  %vm788_vm12 = vcmp.gt.f32.partialorder %v2338_v4, 1.0 }
 0x36b   : > { %v2345_v59 = vsel %vm770_vm13, %v771_v55, %v769_v5  ;;  %v776_v60 = vsel %vm775_vm14, %v765_v40, %v774_v56  ;;  %vm821_vm13 = vcmp.lt.f32.partialorder %v2335_v48, 0.0 }
 0x36c   : > { %v2347_v61 = vsel %vm777_vm15, %v778_v57, %v776_v60  ;;  %848 = vrot.lane.b32.xlu0 %v2345_v59, %s1805_s21  ;;  %v898_v62 = vrot.slane %v2345_v59, 7  ;;  %780 = vst.msk [vmem:[%s2353_s10] sm:$0xff] %vm2906_vm7, %v2345_v59  ;;  %v926_v8 = vrot.slane %v2345_v59, 1 }
 0x36d   : > { %851 = vrot.lane.b32.xlu1 %v2347_v61, %s1805_s21  ;;  %v899_v63 = vrot.slane %v2347_v61, 7  ;;  %781 = vst.msk [vmem:[%s2353_s10 + $0x8] sm:$0xff] %vm2906_vm7, %v2347_v61  ;;  %v927_v9 = vrot.slane %v2347_v61, 1 }
 0x36f   : > { %v2366_v0 = vsel %vm407_vm4, %v899_v63, %v898_v62  ;;  %v2370_v2 = vsel %vm407_vm4, %v898_v62, %v899_v63  ;;  %vm789_vm4 = vcmp.gt.f32.partialorder %v2341_v51, 1.0  ;;  %v2385_v12 = vsel %vm414_vm6, %v926_v8, %v927_v9 }
 0x370   : > { %902 = vrot.lane.b32.xlu0 %v2366_v0, %s1805_s21  ;;  %v2394_v16 = vsel %vm414_vm6, %v927_v9, %v926_v8  ;;  %vm820_vm6 = vcmp.lt.f32.partialorder %v2333_v44, 0.0 }
 0x371   : > { %905 = vrot.lane.b32.xlu1 %v2370_v2, %s1805_s21 }
 0x372   : > { %v1549_v10 = vpop.eup %1548 }
 0x373   : > { %v1551_v11 = vpop.eup %1550  ;;  %v794_v38 = vsel %vm788_vm12, %v1549_v10, %v2338_v4 }
 0x374   : > { %v796_v13 = vmul.f32 %v794_v38, %v794_v38  ;;  %v795_v15 = vsel %vm789_vm4, %v1551_v11, %v2341_v51  ;;  %930 = vrot.lane.b32.xlu0 %v2385_v12, %s1805_s21 }
 0x375   : > { %v797_v17 = vmul.f32 %v795_v15, %v795_v15  ;;  %933 = vrot.lane.b32.xlu1 %v2394_v16, %s1805_s21 }
 0x376   : > { %v798_v18 = vmul.f32 0.0208351, %v796_v13 }
 0x377   : > { %v799_v19 = vmul.f32 0.0208351, %v797_v17 }
 0x378   : > { %v800_v1 = vadd.f32 -0.085133, %v798_v18 }
 0x379   : > { %v801_v20 = vadd.f32 -0.085133, %v799_v19 }
 0x37a   : > { %v802_v21 = vmul.f32 %v800_v1, %v796_v13 }
 0x37b   : > { %v803_v22 = vmul.f32 %v801_v20, %v797_v17 }
 0x37c   : > { %v804_v14 = vadd.f32 0.180141, %v802_v21 }
 0x37d   : > { %v805_v39 = vadd.f32 0.180141, %v803_v22 }
 0x37e   : > { %v806_v23 = vmul.f32 %v804_v14, %v796_v13 }
 0x37f   : > { %v807_v24 = vmul.f32 %v805_v39, %v797_v17 }
 0x380   : > { %v808_v25 = vadd.f32 -0.3302995, %v806_v23 }
 0x381   : > { %v809_v26 = vadd.f32 -0.3302995, %v807_v24 }
 0x382   : > { %v810_v6 = vmul.f32 %v808_v25, %v796_v13 }
 0x383   : > { %v811_v27 = vmul.f32 %v809_v26, %v797_v17  ;;  %v970_v26 = vsel %vm348_vm3, %v2366_v0, 0.0 }
 0x384   : > { %v812_v28 = vadd.f32 0.999866, %v810_v6 }
 0x385   : > { %v813_v29 = vadd.f32 0.999866, %v811_v27  ;;  %v975_v27 = vsel %vm351_vm5, %v2394_v16, 0.0 }
 0x386   : > { %v814_v30 = vmul.f32 %v812_v28, %v794_v38 }
 0x387   : > { %v815_v31 = vmul.f32 %v813_v29, %v795_v15  ;;  %v972_v29 = vsub.f32 %v2345_v59, %v970_v26 }
 0x388   : > { %v816_v7 = vsub.f32 1.5707964, %v814_v30 }
 0x389   : > { %v817_v32 = vsub.f32 1.5707964, %v815_v31 }
 0x38a   : > { %v818_v33 = vsel %vm788_vm12, %v816_v7, %v814_v30  ;;  %v976_v30 = vsub.f32 %v2345_v59, %v2385_v12 }
 0x38b   : > { %v822_v34 = vsub.f32 0.0, %v818_v33  ;;  %v819_v35 = vsel %vm789_vm4, %v817_v32, %v815_v31  ;;  %v973_v32 = vsub.f32 %v2347_v61, %v2370_v2 }
 0x38c   : > { %v823_v36 = vsub.f32 0.0, %v819_v35 }
 0x38d   : > { %v824_v3 = vsel %vm820_vm6, %v822_v34, %v818_v33  ;;  %v977_v33 = vsub.f32 %v2347_v61, %v975_v27 }
 0x38e   : > { %v826_v37 = vmul.f32 2.546479, %v824_v3  ;;  %v825_v40 = vsel %vm821_vm13, %v823_v36, %v819_v35 }
 0x38f   : > { %v827_v42 = vmul.f32 2.546479, %v825_v40  ;;  %v979_v3 = vmin.f32 %v973_v32, %v977_v33 }
 0x390   : > { %v828_v43 = vadd.f32 4.0, %v826_v37 }
 0x391   : > { %v829_v50 = vadd.f32 4.0, %v827_v42 }
 0x392   : > { %v1452_v52 = vround.rtne.f32 %v828_v43 }
 0x393   : > { %v1453_v53 = vround.rtne.f32 %v829_v50 }
 0x394   : > { %v832_v4 = vmul.f32 45.0, %v1452_v52  ;;  %v1423_v39 = vadd.f32 -8.0, %v1452_v52  ;;  %vm836_vm14 = vcmp.ge.f32.partialorder %v1452_v52, 8.0 }
 0x395   : > { %v833_v55 = vmul.f32 45.0, %v1453_v53  ;;  %v1424_v23 = vadd.f32 -8.0, %v1453_v53  ;;  %vm837_vm15 = vcmp.ge.f32.partialorder %v1453_v53, 8.0 }
 0x396   : > { %834 = vst.msk [vmem:[%s2405_s9] sm:$0xff] %vm2906_vm7, %v832_v4  ;;  %v840_v24 = vsel %vm836_vm14, %v1423_v39, %v1452_v52 }
 0x397   : > { %835 = vst.msk [vmem:[%s2405_s9 + $0x8] sm:$0xff] %vm2906_vm7, %v833_v55  ;;  %v841_v25 = vsel %vm837_vm15, %v1424_v23, %v1453_v53  ;;  %vm842_vm12 = vcmp.ne.f32.partialorder %v840_v24, %v840_v24  ;;  %vm2909_vm7 = vmmov 1  }
 0x398   : > { %vm843_vm4 = vcmp.ne.f32.partialorder %v841_v25, %v841_v25  ;;  %v844_v6 = vsel %vm842_vm12, 127.0, %v840_v24 }
 0x399   : > { %v845_v28 = vsel %vm843_vm4, 127.0, %v841_v25  ;;  %v1454_v7 = vtrunc.f32 %v844_v6  ;;  %vm2949_vm4 = vcmp.gt.f32.partialorder %v979_v3, 0.0 }
 0x39a   : > { %vm2504_vm15 = vmxor %vm2949_vm4, %vm2909_vm7 }
 0x39b   : > { %v2467_v35 = vcvt.f32.s32 %v1454_v7 }
 0x39d   : > { %vm886_vm3 = vcmp.eq.s32.totalorder %v2467_v35, 0  ;;  %vm888_vm5 = vcmp.eq.s32.totalorder %v2467_v35, 4  ;;  %vm960_vm12 = vcmp.eq.s32.totalorder %v2467_v35, 5  ;;  %vm984_vm13 = vcmp.eq.s32.totalorder %v2467_v35, 6 }
 0x39e   : > { %vm2495_vm6 = vmor %vm886_vm3, %vm888_vm5  ;;  %vm2955_vm5 = vcmp.ge.s32.totalorder %v2065_v41, 1  ;;  %vm2956_vm4 = vcmp.eq.s32.totalorder %v2467_v35, 1 }
 0x3de   : > { %v849_v44 = vpop.permute.xlu0 %848 }
 0x3df   : > { %v852_v51 = vpop.permute.xlu1 %851  ;;  %v850_v48 = vsel %vm366_vm0, %v849_v44, %v2345_v59 }
 0x3e0   : > { %854 = vrot.lane.b32.xlu0 %v850_v48, %s1805_s21  ;;  %v853_v56 = vsel %vm366_vm0, %v852_v51, %v2347_v61  ;;  %v2945_v51 = vmov 0 }
 0x3e1   : > { %856 = vrot.lane.b32.xlu1 %v853_v56, %s1805_s21 }
 0x3e2   : > { %v903_v5 = vpop.permute.xlu0 %902 }
 0x3e3   : > { %v906_v57 = vpop.permute.xlu1 %905  ;;  %v904_v60 = vsel %vm366_vm0, %v903_v5, %v2366_v0 }
 0x3e4   : > { %908 = vrot.lane.b32.xlu0 %v904_v60, %s1805_s21  ;;  %v907_v62 = vsel %vm366_vm0, %v906_v57, %v2370_v2  ;;  %v2950_v57 = vmov 0  ;;  %v2953_v60 = vmov 0 }
 0x3e5   : > { %910 = vrot.lane.b32.xlu1 %v907_v62, %s1805_s21  ;;  %v2951_v57 = vsel %vm2504_vm15, 4294967295, %v2950_v57 }
 0x3e6   : > { %v931_v63 = vpop.permute.xlu0 %930 }
 0x3e7   : > { %v934_v8 = vpop.permute.xlu1 %933  ;;  %v932_v9 = vsel %vm366_vm0, %v931_v63, %v2385_v12 }
 0x3e8   : > { %936 = vrot.lane.b32.xlu0 %v932_v9, %s1805_s21  ;;  %v935_v10 = vsel %vm366_vm0, %v934_v8, %v2394_v16  ;;  %v2957_v9 = vmov 0 }
 0x3e9   : > { %938 = vrot.lane.b32.xlu1 %v935_v10, %s1805_s21 }
 0x452   : > { %v855_v11 = vpop.permute.xlu0 %854 }
 0x453   : > { %v857_v38 = vpop.permute.xlu1 %856  ;;  %v858_v13 = vsel %vm366_vm0, %v855_v11, %v2345_v59 }
 0x454   : > { %862 = vrot.lane.b32.xlu0 %v858_v13, %s1807_s23  ;;  %v859_v15 = vsel %vm366_vm0, %v857_v38, %v2347_v61 }
 0x455   : > { %864 = vrot.lane.b32.xlu1 %v859_v15, %s1807_s23 }
 0x456   : > { %v909_v17 = vpop.permute.xlu0 %908 }
 0x457   : > { %v911_v18 = vpop.permute.xlu1 %910  ;;  %v912_v19 = vsel %vm366_vm0, %v909_v17, %v2366_v0  ;;  %v1456_v0 = vtrunc.f32 %v845_v28 }
 0x458   : > { %872 = vrot.lane.b32.xlu0 %v858_v13, %s1806_s13  ;;  %v913_v20 = vsel %vm366_vm0, %v911_v18, %v2370_v2 }
 0x459   : > { %874 = vrot.lane.b32.xlu1 %v859_v15, %s1806_s13  ;;  %v2471_v37 = vcvt.f32.s32 %v1456_v0  ;;  %v2964_v15 = vmov 0 }
 0x45a   : > { %v937_v1 = vpop.permute.xlu0 %936 }
 0x45b   : > { %v939_v21 = vpop.permute.xlu1 %938  ;;  %v940_v22 = vsel %vm366_vm0, %v937_v1, %v2385_v12  ;;  %vm889_vm14 = vcmp.eq.s32.totalorder %v2471_v37, 4 }
 0x45c   : > { %916 = vrot.lane.b32.xlu0 %v912_v19, %s1807_s23  ;;  %v941_v14 = vsel %vm366_vm0, %v939_v21, %v2394_v16  ;;  %v978_v16 = vmin.f32 %v972_v29, %v976_v30  ;;  %v2970_v21 = vmov 0 }
 0x45d   : > { %918 = vrot.lane.b32.xlu1 %v913_v20, %s1807_s23 }
 0x45e   : > { %vm980_vm0 = vcmp.gt.f32.partialorder %v978_v16, 0.0 }
 0x460   : > { %944 = vrot.lane.b32.xlu0 %v940_v22, %s1806_s13 }
 0x461   : > { %946 = vrot.lane.b32.xlu1 %v941_v14, %s1806_s13 }
 0x464   : > { %994 = vrot.lane.b32.xlu0 %v912_v19, %s1806_s13  ;;  %v2967_v19 = vmov 0 }
 0x465   : > { %996 = vrot.lane.b32.xlu1 %v913_v20, %s1806_s13  ;;  %s2658_s13 = scalar_lea.hbm %s2997_s3, %s2651_s18 }
 0x468   : > { %1004 = vrot.lane.b32.xlu0 %v940_v22, %s1807_s23 }
 0x469   : > { %1006 = vrot.lane.b32.xlu1 %v941_v14, %s1807_s23  ;;  %s2664_s23 = scalar_lea.sflag [#allocation8], %s2919_s12 }
 0x4c6   : > { %v863_v31 = vpop.permute.xlu0 %862 }
 0x4c7   : > { %v865_v49 = vpop.permute.xlu1 %864  ;;  %v868_v34 = vsel %vm2908_vm2, %v863_v31, 0.0 }
 0x4c8   : > { %v870_v2 = vsub.f32 %v2345_v59, %v868_v34  ;;  %v869_v43 = vsel %vm2908_vm2, %v865_v49, 0.0 }
 0x4c9   : > { %v871_v55 = vsub.f32 %v2347_v61, %v869_v43 }
 0x4ca   : > { %v873_v58 = vpop.permute.xlu0 %872 }
 0x4cb   : > { %v878_v36 = vsel %vm2907_vm1, %v873_v58, 0.0  ;;  %v875_v12 = vpop.permute.xlu1 %874 }
 0x4cc   : > { %v880_v40 = vsub.f32 %v2345_v59, %v878_v36  ;;  %v879_v42 = vsel %vm2907_vm1, %v875_v12, 0.0  ;;  %vm2491_vm1 = vmxor %vm980_vm0, %vm2909_vm7  ;;  %vm2952_vm0 = vcmp.eq.s32.totalorder %v2471_v37, 0 }
 0x4cd   : > { %v881_v52 = vsub.f32 %v2347_v61, %v879_v42  ;;  %v2946_v51 = vsel %vm2491_vm1, 4294967295, %v2945_v51  ;;  %vm2510_vm3 = vmor %vm2952_vm0, %vm889_vm14  ;;  %vm985_vm0 = vcmp.eq.s32.totalorder %v2471_v37, 6 }
 0x4ce   : > { %v882_v50 = vmin.f32 %v870_v2, %v880_v40  ;;  %v917_v53 = vpop.permute.xlu0 %916  ;;  %v2954_v60 = vsel %vm2510_vm3, 4294967295, %v2953_v60  ;;  %vm2524_vm14 = vmor %vm2956_vm4, %vm960_vm12  ;;  %vm2962_vm12 = vcmp.eq.s32.totalorder %v2471_v37, 5  ;;  %vm2963_vm4 = vcmp.eq.s32.totalorder %v2471_v37, 1 }
 0x4cf   : > { %v919_v4 = vpop.permute.xlu1 %918  ;;  %v922_v44 = vsel %vm2265_vm9, %v917_v53, 0.0  ;;  %v883_v56 = vmin.f32 %v871_v55, %v881_v52  ;;  %v2958_v9 = vsel %vm2524_vm14, 4294967295, %v2957_v9  ;;  %vm2969_vm14 = vcmp.eq.s32.totalorder %v2471_v37, 2 }
 0x4d0   : > { %v923_v46 = vsel %vm2908_vm2, %v919_v4, 0.0  ;;  %v924_v8 = vsub.f32 %v2345_v59, %v922_v44  ;;  %vm2543_vm2 = vmor %vm2963_vm4, %vm2962_vm12  ;;  %vm2981_vm12 = vnez %v2954_v60 }
 0x4d1   : > { %v925_v13 = vsub.f32 %v2347_v61, %v923_v46  ;;  %v2965_v15 = vsel %vm2543_vm2, 4294967295, %v2964_v15  ;;  %vm2556_vm8 = vmor %vm2969_vm14, %vm985_vm0  ;;  %vm2972_vm2 = vmmov 1   ;;  %vm2977_vm0 = vcmp.ge.s32.totalorder %v2065_v41, 1 }
 0x4d2   : > { %v945_v5 = vpop.permute.xlu0 %944  ;;  %v2971_v21 = vsel %vm2556_vm8, 4294967295, %v2970_v21  ;;  %vm2984_vm8 = vnez %v2965_v15 }
 0x4d3   : > { %v950_v62 = vsel %vm2955_vm5, %v945_v5, 0.0  ;;  %v947_v63 = vpop.permute.xlu1 %946  ;;  %vm2959_vm5 = vcmp.gt.f32.partialorder %v882_v50, 0.0 }
 0x4d4   : > { %v952_v10 = vsub.f32 %v2345_v59, %v950_v62  ;;  %v951_v11 = vsel %vm2273_vm10, %v947_v63, 0.0  ;;  %vm2534_vm9 = vmxor %vm2959_vm5, %vm2909_vm7  ;;  %vm885_vm10 = vcmp.gt.f32.partialorder %v883_v56, 0.0  ;;  %vm2966_vm5 = vcmp.eq.s32.totalorder %v2467_v35, 2 }
 0x4d5   : > { %v953_v47 = vsub.f32 %v2347_v61, %v951_v11  ;;  %vm2550_vm7 = vmor %vm2966_vm5, %vm984_vm13 }
 0x4d6   : > { %v954_v17 = vmin.f32 %v924_v8, %v952_v10  ;;  %v995_v18 = vpop.permute.xlu0 %994  ;;  %v2968_v19 = vsel %vm2550_vm7, 4294967295, %v2967_v19  ;;  %vm2565_vm3 = vmxor %vm885_vm10, %vm2972_vm2  ;;  %vm2983_vm7 = vnez %v2958_v9  ;;  %vm1019_vm10 = vcmp.eq.s32.totalorder %v2471_v37, 3 }
 0x4d7   : > { %v955_v1 = vmin.f32 %v925_v13, %v953_v47  ;;  %v997_v20 = vpop.permute.xlu1 %996  ;;  %v1000_v14 = vsel %vm2290_vm11, %v995_v18, 0.0  ;;  %vm2980_vm11 = vcmp.le.s32.totalorder %v2065_v41, 14 }
 0x4d8   : > { %vm956_vm4 = vcmp.gt.f32.partialorder %v954_v17, 0.0  ;;  %v1001_v23 = vsel %vm2977_vm0, %v997_v20, 0.0  ;;  %v1002_v6 = vsub.f32 %v2345_v59, %v1000_v14  ;;  %vm1021_vm0 = vcmp.eq.s32.totalorder %v2471_v37, 7 }
 0x4d9   : > { %vm957_vm13 = vcmp.gt.f32.partialorder %v955_v1, 0.0  ;;  %vm2572_vm14 = vmxor %vm956_vm4, %vm2972_vm2  ;;  %v1003_v28 = vsub.f32 %v2347_v61, %v1001_v23 }
 0x4da   : > { %v1005_v24 = vpop.permute.xlu0 %1004  ;;  %vm2583_vm5 = vmxor %vm957_vm13, %vm2972_vm2  ;;  %vm2982_vm13 = vnez %v2938_v45 }
 0x4db   : > { %v1010_v54 = vsel %vm2980_vm11, %v1005_v24, 0.0  ;;  %v1007_v26 = vpop.permute.xlu1 %1006  ;;  %vm1020_vm11 = vcmp.eq.s32.totalorder %v2467_v35, 7  ;;  %vm966_vm4 = vmand %vm2572_vm14, %vm2983_vm7  ;;  %vm2986_vm14 = vcmp.eq.s32.totalorder %v2467_v35, 3 }
 0x4dc   : > { %v1012_v27 = vsub.f32 %v2345_v59, %v1010_v54  ;;  %v1011_v41 = vsel %vm2982_vm13, %v1007_v26, 0.0  ;;  %vm967_vm13 = vmand %vm2583_vm5, %vm2984_vm8  ;;  %vm2988_vm5 = vmmov 1  }
 0x4dd   : > { %v1013_v29 = vsub.f32 %v2347_v61, %v1011_v41  ;;  %vm2985_vm7 = vmand %vm2534_vm9, %vm2495_vm6 }
 0x4de   : > { %v1014_v45 = vmin.f32 %v1002_v6, %v1012_v27  ;;  %v896_v31 = vsel %vm2985_vm7, 0.0, %v2345_v59  ;;  %vm1022_vm15 = vmor %vm2986_vm14, %vm1020_vm11  ;;  %vm2989_vm11 = vnez %v2946_v51  ;;  %vm2990_vm14 = vnez %v2968_v19 }
 0x4df   : > { %v1015_v30 = vmin.f32 %v1003_v28, %v1013_v29  ;;  %vm2987_vm2 = vmand %vm2565_vm3, %vm2981_vm12  ;;  %v968_v32 = vsel %vm966_vm4, 0.0, %v896_v31 }
 0x4e0   : > { %vm1016_vm1 = vcmp.gt.f32.partialorder %v1014_v45, 0.0  ;;  %v897_v7 = vsel %vm2987_vm2, 0.0, %v2347_v61  ;;  %vm1023_vm8 = vmor %vm1019_vm10, %vm1021_vm0  ;;  %vm2992_vm2 = vnez %v2951_v57  ;;  %vm2993_vm10 = vnez %v2971_v21 }
 0x4e1   : > { %vm1024_vm6 = vmxor %vm1016_vm1, %vm2988_vm5  ;;  %vm1017_vm9 = vcmp.gt.f32.partialorder %v1015_v30, 0.0  ;;  %v969_v59 = vsel %vm967_vm13, 0.0, %v897_v7  ;;  %vm2995_vm0 = vcmask 130048  }
 0x4e2   : > { %vm1025_vm7 = vmxor %vm1017_vm9, %vm2988_vm5 }
 0x4e3   : > { %vm2991_vm3 = vmand %vm2989_vm11, %vm2990_vm14 }
 0x4e4   : > { %v992_v33 = vsel %vm2991_vm3, 0.0, %v968_v32  ;;  %vm1026_vm12 = vmand %vm1024_vm6, %vm1022_vm15 }
 0x4e5   : > { %vm2994_vm4 = vmand %vm2992_vm2, %vm2993_vm10  ;;  %v2641_v49 = vsel %vm1026_vm12, 0.0, %v992_v33 }
 0x4e6   : > { %v993_v61 = vsel %vm2994_vm4, 0.0, %v969_v59  ;;  %vm1027_vm1 = vmand %vm1025_vm7, %vm1023_vm8  ;;  %v1030_v34 = vsel %vm2995_vm0, %v2641_v49, -inf }
 0x4e7   : > { %v2643_v0 = vsel %vm1027_vm1, 0.0, %v993_v61  ;;  %vm2996_vm13 = vmmov %vm2995_vm0 }
 0x4e8   : > { %v1031_v58 = vsel %vm2996_vm13, %v2643_v0, -inf }
 0x4e9   : > { %v1032_v16 = vmax.f32 %v1030_v34, %v1031_v58 }
 0x4eb   : > { %1033 = vmax.xlane.f32.xlu0 %v1032_v16 }
 0x4ec   : > { %1595 = shalt.err (!%p1592_p2)
}
 0x4ed   : > { %s1596_s16 = scalar_lea.hbm %s2658_s13, 256  ;;  %s1600_s1 = scalar_lea.hbm %s2997_s3, 512 }
 0x4ee   : > { %p1597_p4 = scmp.ne.s32.totalorder %s2658_s13, %s1596_s16  ;;  %p1601_p9 = scmp.lt.u32.totalorder %s2658_s13, %s2997_s3 }
 0x4ef   : > { %p1602_p1 = scmp.lt.u32.totalorder %s1600_s1, %s1596_s16  ;;  %p1604_p6 = scmp.lt.u32.totalorder %s1596_s16, %s2658_s13 }
 0x4f0   : > { %p1598_p5 = pnand %p1597_p4, %p2998_p11 }
 0x4f1   : > { %p1603_p3 = por %p1602_p1, %p1601_p9 }
 0x4f2   : > { %p1599_p7 = pneg %p1598_p5 }
 0x4f3   : > { %p1605_p12 = por %p1604_p6, %p1603_p3 }
 0x4f5   : > { %p1606_p13 = pnand %p1605_p12, %p1599_p7 }
 0x4f7   : > { %1609 = shalt.err (!%p1606_p13)
}
 0x4f8   : > { %s1810_s30 = smov 128   ;;  %s1811_s11 = smov 8  }
 0x4f9   : > { %1463 = dma.vmem_to_hbm [thread:$0]  (%p2998_p11), %s2660_s19, 256, %s2658_s13, %s2664_s23, %s1810_s30, %s1810_s30, %s1811_s11  }
 0x4fa   : > { %s2999_s5 = sld [smem:[#allocation26_spill]]  ;;  %s1138_s21 = sshll.u32 %s2353_s10, 4  ;;  %s2698_s21 = int_to_ptr.vmem [resolvable:$true] %s1138_s21 }
 0x4fb   : > { %s3000_s22 = sand.u32 1, %s1882_s0   ;;  %s1610_s27 = scalar_lea.vmem %s2698_s21, 256 }
 0x4fc   : > { %s2703_s3 = scalar_lea.sflag [#allocation11], %s3000_s22  ;;  %p1611_p8 = scmp.ne.s32.totalorder %s2698_s21, %s1610_s27 }
 0x4fd   : > { %s1812_s19 = smov [#allocation10]  }
 0x4fe   : > { %p1612_p10 = pnand %p1611_p8, %p2998_p11  ;;  %s1614_s13 = sshll.u32 %s1812_s19, 4  ;;  %s1615_s13 = int_to_ptr.vmem [resolvable:$false] %s1614_s13 }
 0x4ff   : > { %s1616_s28 = scalar_lea.vmem %s1615_s13, 512  ;;  %p1617_p2 = scmp.lt.s32.totalorder %s2698_s21, %s1615_s13 }
 0x500   : > { %s2695_s16 = scalar_lea.hbm %s2999_s5, %s2651_s18  ;;  %p1613_p0 = pneg %p1612_p10 }
 0x501   : > { %p1618_p4 = scmp.lt.s32.totalorder %s1616_s28, %s1610_s27 }
 0x503   : > { %p1619_p5 = por %p1618_p4, %p1617_p2 }
 0x505   : > { %p1620_p7 = pnand %p1619_p5, %p1613_p0 }
 0x507   : > { %1623 = shalt.err (!%p1620_p7)
}
 0x508   : > { %s1624_s10 = scalar_lea.hbm %s2695_s16, 256  ;;  %s1628_s19 = scalar_lea.hbm %s2999_s5, 512 }
 0x509   : > { %p1625_p9 = scmp.ne.s32.totalorder %s2695_s16, %s1624_s10  ;;  %p1629_p6 = scmp.lt.u32.totalorder %s2695_s16, %s2999_s5 }
 0x50a   : > { %p1630_p12 = scmp.lt.u32.totalorder %s1628_s19, %s1624_s10  ;;  %p1632_p8 = scmp.lt.u32.totalorder %s1624_s10, %s2695_s16 }
 0x50b   : > { %p1626_p1 = pnand %p1625_p9, %p2998_p11 }
 0x50c   : > { %p1631_p13 = por %p1630_p12, %p1629_p6 }
 0x50d   : > { %p1627_p3 = pneg %p1626_p1 }
 0x50e   : > { %p1633_p10 = por %p1632_p8, %p1631_p13 }
 0x510   : > { %p1634_p0 = pnand %p1633_p10, %p1627_p3 }
 0x512   : > { %1637 = shalt.err (!%p1634_p0)
}
 0x513   : > { %1465 = dma.vmem_to_hbm [thread:$0]  (%p2998_p11), %s2698_s21, 256, %s2695_s16, %s2703_s3, %s1810_s30, %s1810_s30, %s1811_s11  }
 0x514   : > { %s3001_s27 = sshll.u32 %s1882_s0, 10  ;;  %s1090_s12 = sshll.u32 %s2121_s24, 4  ;;  %s2738_s12 = int_to_ptr.vmem [resolvable:$true] %s1090_s12 }
 0x515   : > { %s2735_s10 = scalar_lea.hbm %s2899_s2, %s3001_s27  ;;  %s2744_s13 = scalar_lea.hbm %s2901_s4, %s2651_s18 }
 0x516   : > { %s1052_s5 = scalar_lea.sflag [#allocation5], %s1967_s17  ;;  %s1638_s8 = scalar_lea.vmem %s2738_s12, 1024 }
 0x517   : > { %p1639_p2 = scmp.ne.s32.totalorder %s2738_s12, %s1638_s8  ;;  %s1813_s0 = smov [#allocation6]  }
 0x518   : > { %s1642_s16 = sshll.u32 %s1813_s0, 4  ;;  %s1643_s16 = int_to_ptr.vmem [resolvable:$false] %s1642_s16 }
 0x519   : > { %p1640_p4 = pnand %p1639_p2, %p2998_p11  ;;  %s1644_s24 = scalar_lea.vmem %s1643_s16, 2048 }
 0x51a   : > { %p1645_p7 = scmp.lt.s32.totalorder %s2738_s12, %s1643_s16  ;;  %p1646_p9 = scmp.lt.s32.totalorder %s1644_s24, %s1638_s8 }
 0x51b   : > { %p1641_p5 = pneg %p1640_p4 }
 0x51c   : > { %p1647_p1 = por %p1646_p9, %p1645_p7 }
 0x51e   : > { %p1648_p3 = pnand %p1647_p1, %p1641_p5 }
 0x520   : > { %1651 = shalt.err (!%p1648_p3)
}
 0x521   : > { %s1652_s21 = scalar_lea.hbm %s2735_s10, 1024  ;;  %s1656_s28 = scalar_lea.hbm %s2899_s2, 2048 }
 0x522   : > { %p1653_p6 = scmp.ne.s32.totalorder %s2735_s10, %s1652_s21  ;;  %p1657_p8 = scmp.lt.u32.totalorder %s2735_s10, %s2899_s2 }
 0x523   : > { %p1658_p10 = scmp.lt.u32.totalorder %s1656_s28, %s1652_s21  ;;  %p1660_p2 = scmp.lt.u32.totalorder %s1652_s21, %s2735_s10 }
 0x524   : > { %p1654_p12 = pnand %p1653_p6, %p2998_p11 }
 0x525   : > { %p1659_p0 = por %p1658_p10, %p1657_p8 }
 0x526   : > { %p1655_p13 = pneg %p1654_p12 }
 0x527   : > { %p1661_p4 = por %p1660_p2, %p1659_p0 }
 0x529   : > { %p1662_p5 = pnand %p1661_p4, %p1655_p13 }
 0x52b   : > { %1665 = shalt.err (!%p1662_p5)
}
 0x52c   : > { %1462 = dma.vmem_to_hbm [thread:$0]  (%p2998_p11), %s2738_s12, 1024, %s2735_s10, %s1052_s5, %s1810_s30, %s1810_s30, %s1811_s11  }
 0x52d   : > { %s1122_s8 = sshll.u32 %s2320_s20, 4  ;;  %s2778_s24 = scalar_lea.hbm %s2903_s6, %s2651_s18  ;;  %s2780_s8 = int_to_ptr.vmem [resolvable:$true] %s1122_s8 }
 0x52e   : > { %s1154_s21 = sshll.u32 %s2405_s9, 4  ;;  %s1666_s27 = scalar_lea.vmem %s2780_s8, 256  ;;  %s2810_s21 = int_to_ptr.vmem [resolvable:$true] %s1154_s21 }
 0x52f   : > { %p1667_p7 = scmp.ne.s32.totalorder %s2780_s8, %s1666_s27  ;;  %s1814_s1 = smov [#allocation9]  }
 0x530   : > { %s1670_s28 = sshll.u32 %s1814_s1, 4  ;;  %s1671_s28 = int_to_ptr.vmem [resolvable:$false] %s1670_s28 }
 0x531   : > { %p1668_p9 = pnand %p1667_p7, %p2998_p11  ;;  %s1672_s5 = scalar_lea.vmem %s1671_s28, 512 }
 0x532   : > { %p1673_p3 = scmp.lt.s32.totalorder %s2780_s8, %s1671_s28  ;;  %p1674_p6 = scmp.lt.s32.totalorder %s1672_s5, %s1666_s27 }
 0x533   : > { %p1669_p1 = pneg %p1668_p9 }
 0x534   : > { %p1675_p12 = por %p1674_p6, %p1673_p3 }
 0x536   : > { %p1676_p13 = pnand %p1675_p12, %p1669_p1 }
 0x538   : > { %1679 = shalt.err (!%p1676_p13)
}
 0x539   : > { %s1680_s20 = scalar_lea.hbm %s2744_s13, 256  ;;  %s1684_s22 = scalar_lea.hbm %s2901_s4, 512 }
 0x53a   : > { %p1681_p8 = scmp.ne.s32.totalorder %s2744_s13, %s1680_s20  ;;  %p1685_p2 = scmp.lt.u32.totalorder %s2744_s13, %s2901_s4 }
 0x53b   : > { %p1686_p4 = scmp.lt.u32.totalorder %s1684_s22, %s1680_s20  ;;  %p1688_p7 = scmp.lt.u32.totalorder %s1680_s20, %s2744_s13 }
 0x53c   : > { %p1682_p10 = pnand %p1681_p8, %p2998_p11 }
 0x53d   : > { %p1687_p5 = por %p1686_p4, %p1685_p2 }
 0x53e   : > { %p1683_p0 = pneg %p1682_p10 }
 0x53f   : > { %p1689_p9 = por %p1688_p7, %p1687_p5 }
 0x541   : > { %p1690_p1 = pnand %p1689_p9, %p1683_p0 }
 0x543   : > { %1693 = shalt.err (!%p1690_p1)
}
 0x544   : > { %1464 = dma.vmem_to_hbm [thread:$0]  (%p2998_p11), %s2780_s8, 256, %s2744_s13, %s2664_s23, %s1810_s30, %s1810_s30, %s1811_s11  }
 0x545   : > { %s1694_s16 = scalar_lea.vmem %s2810_s21, 256  ;;  %s1815_s27 = smov [#allocation12]  }
 0x546   : > { %p1695_p3 = scmp.ne.s32.totalorder %s2810_s21, %s1694_s16  ;;  %s1698_s1 = sshll.u32 %s1815_s27, 4  ;;  %s1699_s1 = int_to_ptr.vmem [resolvable:$false] %s1698_s1 }
 0x547   : > { %s1700_s28 = scalar_lea.vmem %s1699_s1, 512  ;;  %p1701_p13 = scmp.lt.s32.totalorder %s2810_s21, %s1699_s1 }
 0x548   : > { %p1696_p6 = pnand %p1695_p3, %p2998_p11  ;;  %p1702_p8 = scmp.lt.s32.totalorder %s1700_s28, %s1694_s16 }
 0x54a   : > { %p1697_p12 = pneg %p1696_p6  ;;  %p1703_p10 = por %p1702_p8, %p1701_p13 }
 0x54c   : > { %p1704_p0 = pnand %p1703_p10, %p1697_p12 }
 0x54e   : > { %1707 = shalt.err (!%p1704_p0)
}
 0x54f   : > { %s1708_s9 = scalar_lea.hbm %s2778_s24, 256  ;;  %s1712_s8 = scalar_lea.hbm %s2903_s6, 512 }
 0x550   : > { %p1709_p2 = scmp.ne.s32.totalorder %s2778_s24, %s1708_s9  ;;  %p1713_p7 = scmp.lt.u32.totalorder %s2778_s24, %s2903_s6 }
 0x551   : > { %p1714_p9 = scmp.lt.u32.totalorder %s1712_s8, %s1708_s9  ;;  %p1716_p3 = scmp.lt.u32.totalorder %s1708_s9, %s2778_s24 }
 0x552   : > { %p1710_p4 = pnand %p1709_p2, %p2998_p11 }
 0x553   : > { %p1715_p1 = por %p1714_p9, %p1713_p7 }
 0x554   : > { %p1711_p5 = pneg %p1710_p4 }
 0x555   : > { %p1717_p6 = por %p1716_p3, %p1715_p1 }
 0x557   : > { %p1718_p12 = pnand %p1717_p6, %p1711_p5 }
 0x559   : > { %1721 = shalt.err (!%p1718_p12)
}
 0x55a   : > { %1466 = dma.vmem_to_hbm [thread:$0]  (%p2998_p11), %s2810_s21, 256, %s2778_s24, %s2703_s3, %s1810_s30, %s1810_s30, %s1811_s11   ;;  %v1816_v43 = vmov 0   ;;  %vm3002_vm5 = vmmov %vm2995_vm0 }
 0x55b   : > { %s1042_s10 = sld [smem:[#allocation2]]  ;;  %s342_s22 = scalar_lea.vmem [#allocation13], %s2317_s25  ;;  %vm3003_vm6 = vmmov %vm2995_vm0 }
 0x55c   : > { %s1170_s19 = sshll.u32 %s342_s22, 4  ;;  %s2846_s21 = scalar_lea.hbm %s2904_s7, %s2651_s18  ;;  %s2838_s19 = int_to_ptr.vmem [resolvable:$true] %s1170_s19 }
 0x55d   : > { %s1077_s25 = scalar_lea.sflag [#allocation14], %s1967_s17  ;;  %s1722_s16 = scalar_lea.vmem %s2838_s19, 256 }
 0x55e   : > { %p1723_p13 = scmp.ne.s32.totalorder %s2838_s19, %s1722_s16  ;;  %s1817_s27 = smov [#allocation13]  }
 0x55f   : > { %s1726_s1 = sshll.u32 %s1817_s27, 4  ;;  %s1727_s1 = int_to_ptr.vmem [resolvable:$false] %s1726_s1 }
 0x560   : > { %p1724_p8 = pnand %p1723_p13, %p2998_p11  ;;  %s1728_s28 = scalar_lea.vmem %s1727_s1, 512 }
 0x561   : > { %p1729_p0 = scmp.lt.s32.totalorder %s2838_s19, %s1727_s1  ;;  %p1730_p2 = scmp.lt.s32.totalorder %s1728_s28, %s1722_s16 }
 0x562   : > { %p1725_p10 = pneg %p1724_p8 }
 0x563   : > { %p1731_p4 = por %p1730_p2, %p1729_p0 }
 0x565   : > { %p1732_p5 = pnand %p1731_p4, %p1725_p10 }
 0x578   : > { %v1034_v35 = vpop.xlane.xlu0 %1033 }
 0x579   : > { %v1035_v36 = vrot.slane %v1034_v35, 4 }
 0x57b   : > { %v1036_v12 = vmax.f32 %v1034_v35, %v1035_v36 }
 0x57d   : > { %v1037_v3 = vrot.slane %v1036_v12, 2 }
 0x57f   : > { %v1038_v37 = vmax.f32 %v1036_v12, %v1037_v3 }
 0x581   : > { %v1039_v2 = vrot.slane %v1038_v37, 1 }
 0x583   : > { %v1040_v40 = vmax.f32 %v1038_v37, %v1039_v2 }
 0x585   : > { %1458 = vpush %v1040_v40 }
 0x5b6   : > { %s1459_s12 = spop %1458 }
 0x5b7   : > { %s1043_s0 = smul.f32 %s1459_s12, %s1042_s10 }
 0x5b9   : > { %v1044_v42 = vstv %s1043_s0 }
 0x5ba   : > { %vm1045_vm15 = vcmp.gt.f32.partialorder %v2641_v49, %v1044_v42  ;;  %vm1046_vm8 = vcmp.gt.f32.partialorder %v2643_v0, %v1044_v42 }
 0x5bb   : > { %v1047_v50 = vsel %vm1045_vm15, 1, %v1816_v43  ;;  %v1048_v52 = vsel %vm1046_vm8, 1, %v1816_v43 }
 0x5bc   : > { %1049 = vst.msk [vmem:[%s342_s22] sm:$0xff] %vm3002_vm5, %v1047_v50 }
 0x5bd   : > { %1050 = vst.msk [vmem:[%s342_s22 + $0x8] sm:$0xff] %vm3003_vm6, %v1048_v52 }
 0x5be   : > { %1735 = shalt.err (!%p1732_p5)
}
 0x5bf   : > { %s1736_s18 = scalar_lea.hbm %s2846_s21, 256  ;;  %s1740_s13 = scalar_lea.hbm %s2904_s7, 512 }
 0x5c0   : > { %p1737_p7 = scmp.ne.s32.totalorder %s2846_s21, %s1736_s18  ;;  %p1741_p3 = scmp.lt.u32.totalorder %s2846_s21, %s2904_s7 }
 0x5c1   : > { %p1742_p6 = scmp.lt.u32.totalorder %s1740_s13, %s1736_s18  ;;  %p1744_p13 = scmp.lt.u32.totalorder %s1736_s18, %s2846_s21 }
 0x5c2   : > { %p1738_p9 = pnand %p1737_p7, %p2998_p11 }
 0x5c3   : > { %p1743_p12 = por %p1742_p6, %p1741_p3 }
 0x5c4   : > { %p1739_p1 = pneg %p1738_p9 }
 0x5c5   : > { %p1745_p8 = por %p1744_p13, %p1743_p12 }
 0x5c7   : > { %p1746_p10 = pnand %p1745_p8, %p1739_p1 }
 0x5c9   : > { %1749 = shalt.err (!%p1746_p10)
}
 0x5ca   : > { %1467 = dma.vmem_to_hbm [thread:$0]  (%p2998_p11), %s2838_s19, 256, %s2846_s21, %s1077_s25, %s1810_s30, %s1810_s30, %s1811_s11  }
 0x5cb PF: > { %s1185_s20 = sand.u32 1, %s1788_s26   ;;  %p3004_p0 = scmp.ne.s32.totalorder %s2934_s15, 0 }
 0x5cc   : > { %p3005_p2 = scmp.ge.s32.totalorder %s1800_s29, 2  ;;  %s1186_s10 = scalar_lea.sflag [#allocation5], %s1185_s20 }
 0x5ce   : > { %p1479_p4 = pnand %p3005_p2, %p3004_p0 }
 0x5d0   : > { %1771 = dma.done.wait (!%p1479_p4), %s1186_s10, 1024  }
 0x5d1   : > { %1773 = vsyncadd (!%p1479_p4), %s1186_s10, 4294966272  ;;  %s3006_s14 = sadd.s32 4294967294, %s1800_s29  }
 0x5d2   : > { %s1194_s12 = sand.u32 1, %s3006_s14  }
 0x5d3   : > { %s1195_s22 = scalar_lea.sflag [#allocation8], %s1194_s12 }
 0x5d4   : > { %1775 = dma.done.wait (!%p1479_p4), %s1195_s22, 512  }
 0x5d5   : > { %1777 = vsyncadd (!%p1479_p4), %s1195_s22, 4294966784  ;;  %s1213_s17 = scalar_lea.sflag [#allocation11], %s1194_s12 }
 0x5d6   : > { %1779 = dma.done.wait (!%p1479_p4), %s1213_s17, 512  }
 0x5d7   : > { %1781 = vsyncadd (!%p1479_p4), %s1213_s17, 4294966784  ;;  %s1231_s30 = scalar_lea.sflag [#allocation14], %s1185_s20 }
 0x5d8   : > { %1783 = dma.done.wait (!%p1479_p4), %s1231_s30, 256  }
 0x5d9   : > { %1785 = vsyncadd (!%p1479_p4), %s1231_s30, 4294967040  ;;  %s3007_s29 = sld [smem:[#allocation22_spill]]  ;;  %s3008_s26 = sld [smem:[#allocation20_spill]] }
 0x5da   : > { %s3009_s27 = sld [smem:[#allocation21_spill]]  ;;  %s3010_s28 = sld [smem:[#allocation23_spill]] }
 0x5df   : > { %p31_p11 = scmp.ge.s32.totalorder %s3007_s29, 4  }
 0x5e1   :  { %33 = sbr.rel (!%p31_p11) target bundleno = 16 (0x10), region = 160 }
 0x5e8   :  { %1236 = vsyncpa [#allocation4], 1 }
 0x5e9   :  { %1238 = vsyncpa [#allocation4 + $0x1], 1 }
 0x5ea   :  { %1239 = vsyncpa [#allocation5], 1 }
 0x5eb   :  { %1241 = vsyncpa [#allocation5 + $0x1], 1 }
 0x5ec   :  { %1242 = vsyncpa [#allocation8], 1 }
 0x5ed   :  { %1244 = vsyncpa [#allocation8 + $0x1], 1 }
 0x5ee   :  { %1245 = vsyncpa [#allocation11], 1 }
 0x5ef   :  { %1247 = vsyncpa [#allocation11 + $0x1], 1 }
 0x5f0   :  { %1248 = vsyncpa [#allocation14], 1 }
 0x5f1   :  { %1250 = vsyncpa [#allocation14 + $0x1], 1 }

</bundles_post_ra>
